<compile_context>
chip_gen: v5e
topology: v5e:2x2
jax: 0.10.0
libtpu: 0.0.40
codegen_flags: <defaults>
</compile_context>

<pallas_src>
import functools

import jax
import jax.numpy as jnp
from jax.experimental import pallas as pl
from jax.experimental.pallas import tpu as pltpu

IN_FEATURES = 28 * 28      # 784
IN_PADDED = 896            # 7 * 128 — lane-aligned contraction dim for fc1
H1, H2 = 512, 256
OUT_FEATURES = 10
OUT_PADDED = 128           # lane-dense logits / output tile; sliced to 10 outside
_NEG_BIG = -1e30           # Python float literal -> jaxpr literal, NOT a captured const


def _round_up(n, m):
    return (n + m - 1) // m * m


def ffnn_kernel(x_ref, w1_ref, b1_ref, w2_ref, b2_ref, w3_ref, b3_ref, o_ref):
    # fc1 + relu  (bf16 MXU inputs, f32 accumulation, f32 epilogue)
    h1 = jnp.dot(x_ref[...], w1_ref[...], preferred_element_type=jnp.float32)
    h1 = jnp.maximum(h1 + b1_ref[...], 0.0).astype(jnp.bfloat16)
    # fc2 + relu
    h2 = jnp.dot(h1, w2_ref[...], preferred_element_type=jnp.float32)
    h2 = jnp.maximum(h2 + b2_ref[...], 0.0).astype(jnp.bfloat16)
    # fc3 (out-features padded 10 -> 128 so the store is an unmasked, lane-dense vst)
    logits = jnp.dot(h2, w3_ref[...], preferred_element_type=jnp.float32) + b3_ref[...]
    # Mask padded columns so the log-softmax reductions ignore them.
    col = jax.lax.broadcasted_iota(jnp.int32, logits.shape, 1)
    logits = jnp.where(col < OUT_FEATURES, logits, _NEG_BIG)
    # Numerically stable log_softmax along dim=1 (all in f32).
    m = jnp.max(logits, axis=1, keepdims=True)
    shifted = logits - m
    lse = jnp.log(jnp.sum(jnp.exp(shifted), axis=1, keepdims=True))
    o_ref[...] = (shifted - lse).astype(o_ref.dtype)


def init_params(key):
    """Deterministic init matching PyTorch nn.Linear default:
    U(-1/sqrt(fan_in), 1/sqrt(fan_in)) for weight and bias.
    Weights stored transposed: (in_features, out_features), f32."""
    def linear(k, fan_in, fan_out):
        kw, kb = jax.random.split(k)
        bound = 1.0 / jnp.sqrt(fan_in)
        w = jax.random.uniform(kw, (fan_in, fan_out), jnp.float32, -bound, bound)
        b = jax.random.uniform(kb, (1, fan_out), jnp.float32, -bound, bound)
        return w, b

    k1, k2, k3 = jax.random.split(key, 3)
    w1, b1 = linear(k1, IN_FEATURES, H1)
    w2, b2 = linear(k2, H1, H2)
    w3, b3 = linear(k3, H2, OUT_FEATURES)
    return (w1, b1, w2, b2, w3, b3)


def prepare_params(params):
    """One-time pad + bf16 cast of the PyTorch-layout params.
    Do this once outside the hot loop so the padded bf16 weights are reused
    across calls (the kernel keeps them VMEM-resident across grid steps)."""
    w1, b1, w2, b2, w3, b3 = params
    w1p = jnp.zeros((IN_PADDED, H1), jnp.bfloat16).at[:IN_FEATURES, :].set(
        w1.astype(jnp.bfloat16))
    w3p = jnp.zeros((H2, OUT_PADDED), jnp.bfloat16).at[:, :OUT_FEATURES].set(
        w3.astype(jnp.bfloat16))
    b3p = jnp.zeros((1, OUT_PADDED), jnp.float32).at[:, :OUT_FEATURES].set(b3)
    return (w1p, b1.astype(jnp.float32), w2.astype(jnp.bfloat16),
            b2.astype(jnp.float32), w3p, b3p)


@functools.partial(jax.jit, static_argnames=("tm",))
def ffnn_forward(x, prepared_params, *, tm=256):
    """x: (B, 1, 28, 28) or (B, 784). Returns (B, 10) f32 log-probabilities.

    tm=256 matches the v6e/v7x 256-wide MXU (use tm=128 on v5e); the tile is
    shrunk automatically for tiny batches. Batch is zero-padded to a multiple
    of the tile and sliced back after the kernel.
    """
    w1, b1, w2, b2, w3, b3 = prepared_params
    x2d = x.reshape(-1, IN_FEATURES)                 # mirrors x.view(-1, 28*28)
    B = x2d.shape[0]

    tm_eff = min(tm, _round_up(B, 8))                # sublane-aligned batch tile
    b_pad = _round_up(B, tm_eff)

    xp = jnp.zeros((b_pad, IN_PADDED), jnp.bfloat16)
    xp = xp.at[:B, :IN_FEATURES].set(x2d.astype(jnp.bfloat16))

    fixed = lambda i: (0, 0)                         # weights resident across grid
    out = pl.pallas_call(
        ffnn_kernel,
        out_shape=jax.ShapeDtypeStruct((b_pad, OUT_PADDED), jnp.float32),
        grid=(b_pad // tm_eff,),
        in_specs=[
            pl.BlockSpec((tm_eff, IN_PADDED), lambda i: (i, 0)),   # x tile
            pl.BlockSpec((IN_PADDED, H1), fixed),                  # w1
            pl.BlockSpec((1, H1), fixed),                          # b1
            pl.BlockSpec((H1, H2), fixed),                         # w2
            pl.BlockSpec((1, H2), fixed),                          # b2
            pl.BlockSpec((H2, OUT_PADDED), fixed),                 # w3 (padded)
            pl.BlockSpec((1, OUT_PADDED), fixed),                  # b3 (padded)
        ],
        out_specs=pl.BlockSpec((tm_eff, OUT_PADDED), lambda i: (i, 0)),
        compiler_params=pltpu.CompilerParams(
            dimension_semantics=("parallel",),       # shard batch tiles across TCs (v7x)
        ),
    )(xp, w1, b1, w2, b2, w3, b3)

    return out[:B, :OUT_FEATURES]


if __name__ == "__main__":
    key = jax.random.PRNGKey(0)
    kx, kp = jax.random.split(key)

    # MNIST-like input: batch=2, NCHW (2, 1, 28, 28); forward flattens to (2, 784).
    x = jax.random.normal(kx, (2, 1, 28, 28), dtype=jnp.float32)
    raw_params = init_params(kp)
    params = prepare_params(raw_params)              # pad + bf16 once, reuse across calls

    out = ffnn_forward(x, params)
    out = jax.block_until_ready(out)

    assert out.shape == (2, 10)
    # Log-probabilities exponentiate to a distribution (normalization is exact in f32).
    sums = jnp.exp(out).sum(axis=1)
    assert bool(jnp.all(jnp.abs(sums - 1.0) < 1e-4))

    # Cross-check against a pure-JAX reference using the same bf16 weights.
    def ref(x2d, p):
        w1, b1, w2, b2, w3, b3 = p
        xb = jnp.zeros((x2d.shape[0], IN_PADDED), jnp.bfloat16)
        xb = xb.at[:, :IN_FEATURES].set(x2d.astype(jnp.bfloat16))
        h1 = jnp.maximum(jnp.dot(xb, w1, preferred_element_type=jnp.float32) + b1, 0.0)
        h2 = jnp.maximum(jnp.dot(h1.astype(jnp.bfloat16), w2,
                                 preferred_element_type=jnp.float32) + b2, 0.0)
        logits = jnp.dot(h2.astype(jnp.bfloat16), w3,
                         preferred_element_type=jnp.float32) + b3
        return jax.nn.log_softmax(logits[:, :OUT_FEATURES], axis=1)

    ref_out = ref(x.reshape(-1, IN_FEATURES), params)
    assert bool(jnp.all(jnp.abs(out - ref_out) < 1e-2))

    print("KERNEL_OK")
</pallas_src>

<mosaic_0001>
module attributes {stable_mosaic.version = 11 : i64} {
  func.func @ffnn_kernel(%arg0: i32, %arg1: memref<8x896xbf16, #tpu.memory_space<vmem>>, %arg2: memref<896x512xbf16, #tpu.memory_space<vmem>>, %arg3: memref<1x512xf32, #tpu.memory_space<vmem>>, %arg4: memref<512x256xbf16, #tpu.memory_space<vmem>>, %arg5: memref<1x256xf32, #tpu.memory_space<vmem>>, %arg6: memref<256x128xbf16, #tpu.memory_space<vmem>>, %arg7: memref<1x128xf32, #tpu.memory_space<vmem>>, %arg8: memref<8x128xf32, #tpu.memory_space<vmem>>) attributes {dimension_semantics = [#tpu.dimension_semantics<parallel>], iteration_bounds = array<i64: 1>, scalar_prefetch = 0 : i64, scratch_operands = 0 : i64, tpu.core_type = #tpu.core_type<tc>, window_params = [{transform_indices = @transform_0, window_bounds = array<i64: 8, 896>}, {pipeline_mode = #tpu.pipeline_mode<synchronous>, transform_indices = @transform_1, window_bounds = array<i64: 896, 512>}, {pipeline_mode = #tpu.pipeline_mode<synchronous>, transform_indices = @transform_2, window_bounds = array<i64: 1, 512>}, {pipeline_mode = #tpu.pipeline_mode<synchronous>, transform_indices = @transform_3, window_bounds = array<i64: 512, 256>}, {pipeline_mode = #tpu.pipeline_mode<synchronous>, transform_indices = @transform_4, window_bounds = array<i64: 1, 256>}, {pipeline_mode = #tpu.pipeline_mode<synchronous>, transform_indices = @transform_5, window_bounds = array<i64: 256, 128>}, {pipeline_mode = #tpu.pipeline_mode<synchronous>, transform_indices = @transform_6, window_bounds = array<i64: 1, 128>}, {transform_indices = @transform_7, window_bounds = array<i64: 8, 128>}]} {
    %c0 = arith.constant 0 : index
    %c0_0 = arith.constant 0 : index
    %0 = vector.load %arg1[%c0, %c0_0] : memref<8x896xbf16, #tpu.memory_space<vmem>>, vector<8x896xbf16>
    %c0_1 = arith.constant 0 : index
    %c0_2 = arith.constant 0 : index
    %1 = vector.load %arg2[%c0_1, %c0_2] : memref<896x512xbf16, #tpu.memory_space<vmem>>, vector<896x512xbf16>
    %cst = arith.constant dense<0.000000e+00> : vector<8x512xf32>
    %2 = tpu.matmul %0, %1, %cst {dimension_numbers = #tpu.dot_dimension_numbers<[1], [0], [0], [1], [0, 0, 1, 1], [], []>} : vector<8x896xbf16>, vector<896x512xbf16>, vector<8x512xf32> -> vector<8x512xf32>
    %c0_3 = arith.constant 0 : index
    %c0_4 = arith.constant 0 : index
    %3 = vector.load %arg3[%c0_3, %c0_4] : memref<1x512xf32, #tpu.memory_space<vmem>>, vector<1x512xf32>
    %4 = vector.broadcast %3 : vector<1x512xf32> to vector<8x512xf32>
    %5 = arith.addf %2, %4 : vector<8x512xf32>
    %cst_5 = arith.constant 0.000000e+00 : f32
    %6 = vector.broadcast %cst_5 : f32 to vector<8x512xf32>
    %7 = arith.maximumf %5, %6 : vector<8x512xf32>
    %8 = arith.truncf %7 : vector<8x512xf32> to vector<8x512xbf16>
    %c0_6 = arith.constant 0 : index
    %c0_7 = arith.constant 0 : index
    %9 = vector.load %arg4[%c0_6, %c0_7] : memref<512x256xbf16, #tpu.memory_space<vmem>>, vector<512x256xbf16>
    %cst_8 = arith.constant dense<0.000000e+00> : vector<8x256xf32>
    %10 = tpu.matmul %8, %9, %cst_8 {dimension_numbers = #tpu.dot_dimension_numbers<[1], [0], [0], [1], [0, 0, 1, 1], [], []>} : vector<8x512xbf16>, vector<512x256xbf16>, vector<8x256xf32> -> vector<8x256xf32>
    %c0_9 = arith.constant 0 : index
    %c0_10 = arith.constant 0 : index
    %11 = vector.load %arg5[%c0_9, %c0_10] : memref<1x256xf32, #tpu.memory_space<vmem>>, vector<1x256xf32>
    %12 = vector.broadcast %11 : vector<1x256xf32> to vector<8x256xf32>
    %13 = arith.addf %10, %12 : vector<8x256xf32>
    %cst_11 = arith.constant 0.000000e+00 : f32
    %14 = vector.broadcast %cst_11 : f32 to vector<8x256xf32>
    %15 = arith.maximumf %13, %14 : vector<8x256xf32>
    %16 = arith.truncf %15 : vector<8x256xf32> to vector<8x256xbf16>
    %c0_12 = arith.constant 0 : index
    %c0_13 = arith.constant 0 : index
    %17 = vector.load %arg6[%c0_12, %c0_13] : memref<256x128xbf16, #tpu.memory_space<vmem>>, vector<256x128xbf16>
    %cst_14 = arith.constant dense<0.000000e+00> : vector<8x128xf32>
    %18 = tpu.matmul %16, %17, %cst_14 {dimension_numbers = #tpu.dot_dimension_numbers<[1], [0], [0], [1], [0, 0, 1, 1], [], []>} : vector<8x256xbf16>, vector<256x128xbf16>, vector<8x128xf32> -> vector<8x128xf32>
    %c0_15 = arith.constant 0 : index
    %c0_16 = arith.constant 0 : index
    %19 = vector.load %arg7[%c0_15, %c0_16] : memref<1x128xf32, #tpu.memory_space<vmem>>, vector<1x128xf32>
    %20 = vector.broadcast %19 : vector<1x128xf32> to vector<8x128xf32>
    %21 = arith.addf %18, %20 : vector<8x128xf32>
    %22 = tpu.iota {dimensions = array<i32: 1>} : vector<8x128xi32>
    %c10_i32 = arith.constant 10 : i32
    %23 = vector.broadcast %c10_i32 : i32 to vector<8x128xi32>
    %24 = arith.cmpi slt, %22, %23 : vector<8x128xi32>
    %cst_17 = arith.constant -1.000000e+30 : f32
    %25 = vector.broadcast %cst_17 : f32 to vector<8x128xf32>
    %26 = arith.select %24, %21, %25 : vector<8x128xi1>, vector<8x128xf32>
    %cst_18 = arith.constant dense<0xFF800000> : vector<8xf32>
    %27 = vector.multi_reduction <maximumf>, %26, %cst_18 [1] : vector<8x128xf32> to vector<8xf32>
    %28 = vector.shape_cast %27 : vector<8xf32> to vector<8x1xf32>
    %29 = vector.broadcast %28 : vector<8x1xf32> to vector<8x128xf32>
    %30 = arith.subf %26, %29 : vector<8x128xf32>
    %31 = math.exp %30 : vector<8x128xf32>
    %cst_19 = arith.constant dense<0.000000e+00> : vector<8xf32>
    %32 = vector.multi_reduction <add>, %31, %cst_19 [1] : vector<8x128xf32> to vector<8xf32>
    %33 = vector.shape_cast %32 : vector<8xf32> to vector<8x1xf32>
    %34 = math.log %33 : vector<8x1xf32>
    %35 = vector.broadcast %34 : vector<8x1xf32> to vector<8x128xf32>
    %36 = arith.subf %30, %35 : vector<8x128xf32>
    %c0_20 = arith.constant 0 : index
    %c0_21 = arith.constant 0 : index
    %37 = vector.load %arg8[%c0_20, %c0_21] : memref<8x128xf32, #tpu.memory_space<vmem>>, vector<8x128xf32>
    tpu.vector_store %arg8[%c0_20, %c0_21], %36 {strides = array<i32>} : memref<8x128xf32, #tpu.memory_space<vmem>>, vector<8x128xf32>,
    return
  }
  func.func @transform_0(%arg0: i32) -> (i32, i32) {
    %c0_i32 = arith.constant 0 : i32
    %c0_i32_0 = arith.constant 0 : i32
    return %arg0, %c0_i32 : i32, i32
  }
  func.func @transform_1(%arg0: i32) -> (i32, i32) {
    %c0_i32 = arith.constant 0 : i32
    %c0_i32_0 = arith.constant 0 : i32
    %c0_i32_1 = arith.constant 0 : i32
    return %c0_i32, %c0_i32_0 : i32, i32
  }
  func.func @transform_2(%arg0: i32) -> (i32, i32) {
    %c0_i32 = arith.constant 0 : i32
    %c0_i32_0 = arith.constant 0 : i32
    %c0_i32_1 = arith.constant 0 : i32
    return %c0_i32, %c0_i32_0 : i32, i32
  }
  func.func @transform_3(%arg0: i32) -> (i32, i32) {
    %c0_i32 = arith.constant 0 : i32
    %c0_i32_0 = arith.constant 0 : i32
    %c0_i32_1 = arith.constant 0 : i32
    return %c0_i32, %c0_i32_0 : i32, i32
  }
  func.func @transform_4(%arg0: i32) -> (i32, i32) {
    %c0_i32 = arith.constant 0 : i32
    %c0_i32_0 = arith.constant 0 : i32
    %c0_i32_1 = arith.constant 0 : i32
    return %c0_i32, %c0_i32_0 : i32, i32
  }
  func.func @transform_5(%arg0: i32) -> (i32, i32) {
    %c0_i32 = arith.constant 0 : i32
    %c0_i32_0 = arith.constant 0 : i32
    %c0_i32_1 = arith.constant 0 : i32
    return %c0_i32, %c0_i32_0 : i32, i32
  }
  func.func @transform_6(%arg0: i32) -> (i32, i32) {
    %c0_i32 = arith.constant 0 : i32
    %c0_i32_0 = arith.constant 0 : i32
    %c0_i32_1 = arith.constant 0 : i32
    return %c0_i32, %c0_i32_0 : i32, i32
  }
  func.func @transform_7(%arg0: i32) -> (i32, i32) {
    %c0_i32 = arith.constant 0 : i32
    %c0_i32_0 = arith.constant 0 : i32
    return %arg0, %c0_i32 : i32, i32
  }
}

</mosaic_0001>

<bundles_post_ra>
// kernel: ffnn_forward.1
= control target key start
LH: loop header
LB: loop body
LE: loop exit
PB: predicated region body
PF: predicated region fallthrough
CT: control target
= control target key end

     0   :  { %12 = vsyncpa [#allocation3], 0  ;;  %s4285_s0 = inlined_call_operand.vmem [shape: bf16[8,896], index: 0, kind: input, shape index: {}]   ;;  %s4286_s1 = inlined_call_operand.hbm [shape: bf16[896,512], index: 1, kind: input, shape index: {}]   ;;  %s4287_s2 = inlined_call_operand.vmem [shape: f32[1,512], index: 2, kind: input, shape index: {}]   ;;  %s4288_s3 = inlined_call_operand.hbm [shape: bf16[512,256], index: 3, kind: input, shape index: {}]   ;;  %s4289_s4 = inlined_call_operand.vmem [shape: f32[1,256], index: 4, kind: input, shape index: {}]   ;;  %s4290_s5 = inlined_call_operand.vmem [shape: bf16[256,128], index: 5, kind: input, shape index: {}]   ;;  %s4291_s6 = inlined_call_operand.vmem [shape: f32[1,128], index: 6, kind: input, shape index: {}]   ;;  %s4292_s7 = inlined_call_operand.vmem [shape: f32[8,128], index: 7, kind: output, shape index: {}]  }
   0x1   :  { %s20_s26 = sshll.u32 %s4286_s1, 4  ;;  %s21_s26 = int_to_ptr.hbm [resolvable:$true] %s20_s26 }
   0x2   :  { %13 = vsyncpa [#allocation5], 0  ;;  %s4073_s27 = smov [#allocation2]   ;;  %s35_s8 = sshll.u32 %s4288_s3, 4  ;;  %s36_s8 = int_to_ptr.hbm [resolvable:$true] %s35_s8 }
   0x3   :  { %s22_s28 = sshll.u32 %s4073_s27, 4  ;;  %s4074_s9 = smov 256   ;;  %s23_s28 = int_to_ptr.vmem [resolvable:$true] %s22_s28 }
   0x4   :  { %s4075_s10 = smov 16   ;;  %s4076_s11 = smov [#allocation4]  }
   0x5   :  { %28 = dma.hbm_to_vmem [thread:$0]  %s21_s26, 28672, %s23_s28, [#allocation3], %s4074_s9, %s4074_s9, %s4075_s10  }
   0x6   :  { %s37_s12 = sshll.u32 %s4076_s11, 4  ;;  %s4077_s13 = smov 128   ;;  %s38_s12 = int_to_ptr.vmem [resolvable:$true] %s37_s12 }
   0x7   :  { %s4078_s14 = smov 8  }
   0x8   :  { %43 = dma.hbm_to_vmem [thread:$0]  %s36_s8, 8192, %s38_s12, [#allocation5], %s4077_s13, %s4077_s13, %s4078_s14  }
   0x9   :  { %4069 = dma.done.wait [#allocation3], 28672  }
   0xa   :  { %4070 = vsyncadd [#allocation3], 4294938624 }
   0xb   :  { %4071 = dma.done.wait [#allocation5], 8192  }
   0xc   :  { %4072 = vsyncadd [#allocation5], 4294959104  ;;  %v2604_v0 = vld [vmem:[#allocation2 + $0xe0] sm:$0xf]  ;;  %v3736_v1 = vld [vmem:[#allocation2 + $0xec] sm:$0xf0] }
   0xd   :  { %v2732_v2 = vld [vmem:[#allocation2 + $0x1e0] sm:$0xf]  ;;  %v2605_v3 = vor.u32 %v3736_v1, %v2604_v0  ;;  %v3768_v4 = vld [vmem:[#allocation2 + $0x1ec] sm:$0xf0] }
   0xe   :  { %v2860_v5 = vld [vmem:[#allocation2 + $0x2e0] sm:$0xf]  ;;  %v3800_v6 = vld [vmem:[#allocation2 + $0x2ec] sm:$0xf0]  ;;  %v2733_v7 = vor.u32 %v3768_v4, %v2732_v2 }
   0xf   :  { %v2861_v8 = vor.u32 %v3800_v6, %v2860_v5  ;;  %v2988_v9 = vld [vmem:[#allocation2 + $0x3e0] sm:$0xf]  ;;  %v3832_v10 = vld [vmem:[#allocation2 + $0x3ec] sm:$0xf0]  ;;  %1441 = vmatpush.bf16.msra.mxu0 %v2605_v3 }
  0x10   :  { %v2588_v11 = vld [vmem:[#allocation2 + $0xc0] sm:$0xf]  ;;  %v2989_v12 = vor.u32 %v3832_v10, %v2988_v9  ;;  %v3732_v13 = vld [vmem:[#allocation2 + $0xcc] sm:$0xf0]  ;;  %1454 = vmatpush.bf16.msra.mxu1 %v2733_v7 }
  0x11   :  { %v2716_v14 = vld [vmem:[#allocation2 + $0x1c0] sm:$0xf]  ;;  %v3764_v15 = vld [vmem:[#allocation2 + $0x1cc] sm:$0xf0]  ;;  %1467 = vmatpush.bf16.msra.mxu2 %v2861_v8  ;;  %v2589_v16 = vor.u32 %v3732_v13, %v2588_v11 }
  0x12   :  { %v2717_v17 = vor.u32 %v3764_v15, %v2716_v14  ;;  %v2844_v18 = vld [vmem:[#allocation2 + $0x2c0] sm:$0xf]  ;;  %v3796_v19 = vld [vmem:[#allocation2 + $0x2cc] sm:$0xf0]  ;;  %1480 = vmatpush.bf16.msra.mxu3 %v2989_v12 }
  0x13   :  { %v2972_v20 = vld [vmem:[#allocation2 + $0x3c0] sm:$0xf]  ;;  %v2845_v21 = vor.u32 %v3796_v19, %v2844_v18  ;;  %v3828_v22 = vld [vmem:[#allocation2 + $0x3cc] sm:$0xf0]  ;;  %1442 = vmatpush.bf16.msra.mxu0 %v2589_v16 }
  0x14   :  { %v2572_v23 = vld [vmem:[#allocation2 + $0xa0] sm:$0xf]  ;;  %v3728_v24 = vld [vmem:[#allocation2 + $0xac] sm:$0xf0]  ;;  %v2973_v25 = vor.u32 %v3828_v22, %v2972_v20  ;;  %1455 = vmatpush.bf16.msra.mxu1 %v2717_v17 }
  0x15   :  { %v2700_v26 = vld [vmem:[#allocation2 + $0x1a0] sm:$0xf]  ;;  %v3760_v27 = vld [vmem:[#allocation2 + $0x1ac] sm:$0xf0]  ;;  %v2573_v29 = vor.u32 %v3728_v24, %v2572_v23  ;;  %1468 = vmatpush.bf16.msra.mxu2 %v2845_v21 }
  0x16   :  { %v2828_v28 = vld [vmem:[#allocation2 + $0x2a0] sm:$0xf]  ;;  %v3792_v30 = vld [vmem:[#allocation2 + $0x2ac] sm:$0xf0]  ;;  %v2701_v33 = vor.u32 %v3760_v27, %v2700_v26  ;;  %1481 = vmatpush.bf16.msra.mxu3 %v2973_v25 }
  0x17   :  { %v2956_v31 = vld [vmem:[#allocation2 + $0x3a0] sm:$0xf]  ;;  %v3824_v32 = vld [vmem:[#allocation2 + $0x3ac] sm:$0xf0]  ;;  %v2829_v34 = vor.u32 %v3792_v30, %v2828_v28  ;;  %1443 = vmatpush.bf16.msra.mxu0 %v2573_v29 }
  0x18   :  { %v2556_v35 = vld [vmem:[#allocation2 + $0x80] sm:$0xf]  ;;  %v3724_v36 = vld [vmem:[#allocation2 + $0x8c] sm:$0xf0]  ;;  %v2957_v38 = vor.u32 %v3824_v32, %v2956_v31  ;;  %1456 = vmatpush.bf16.msra.mxu1 %v2701_v33 }
  0x19   :  { %v2684_v37 = vld [vmem:[#allocation2 + $0x180] sm:$0xf]  ;;  %v3756_v39 = vld [vmem:[#allocation2 + $0x18c] sm:$0xf0]  ;;  %v2557_v44 = vor.u32 %v3724_v36, %v2556_v35  ;;  %1469 = vmatpush.bf16.msra.mxu2 %v2829_v34 }
  0x1a   :  { %v2812_v40 = vld [vmem:[#allocation2 + $0x280] sm:$0xf]  ;;  %v3788_v41 = vld [vmem:[#allocation2 + $0x28c] sm:$0xf0]  ;;  %v2685_v45 = vor.u32 %v3756_v39, %v2684_v37  ;;  %1482 = vmatpush.bf16.msra.mxu3 %v2957_v38  ;;  %v3734_v37 = vld [vmem:[#allocation2 + $0xe4] sm:$0xf] }
  0x1b   :  { %v2940_v42 = vld [vmem:[#allocation2 + $0x380] sm:$0xf]  ;;  %v3820_v43 = vld [vmem:[#allocation2 + $0x38c] sm:$0xf0]  ;;  %v2813_v46 = vor.u32 %v3788_v41, %v2812_v40  ;;  %1444 = vmatpush.bf16.msra.mxu0 %v2557_v44  ;;  %v2606_v38 = vld [vmem:[#allocation2 + $0xf0] sm:$0xf0] }
  0x1c   :  { %v2540_v47 = vld [vmem:[#allocation2 + $0x60] sm:$0xf]  ;;  %v3720_v48 = vld [vmem:[#allocation2 + $0x6c] sm:$0xf0]  ;;  %v2941_v50 = vor.u32 %v3820_v43, %v2940_v42  ;;  %1457 = vmatpush.bf16.msra.mxu1 %v2685_v45 }
  0x1d   :  { %v2668_v49 = vld [vmem:[#allocation2 + $0x160] sm:$0xf]  ;;  %v3752_v51 = vld [vmem:[#allocation2 + $0x16c] sm:$0xf0]  ;;  %v2541_v56 = vor.u32 %v3720_v48, %v2540_v47  ;;  %1470 = vmatpush.bf16.msra.mxu2 %v2813_v46  ;;  %v2609_v46 = vor.u32 %v3734_v37, %v2606_v38 }
  0x1e   :  { %v2796_v52 = vld [vmem:[#allocation2 + $0x260] sm:$0xf]  ;;  %v3784_v53 = vld [vmem:[#allocation2 + $0x26c] sm:$0xf0]  ;;  %v2669_v57 = vor.u32 %v3752_v51, %v2668_v49  ;;  %1483 = vmatpush.bf16.msra.mxu3 %v2941_v50  ;;  %v3730_v50 = vld [vmem:[#allocation2 + $0xc4] sm:$0xf] }
  0x1f   :  { %v2924_v54 = vld [vmem:[#allocation2 + $0x360] sm:$0xf]  ;;  %v3816_v55 = vld [vmem:[#allocation2 + $0x36c] sm:$0xf0]  ;;  %v2797_v58 = vor.u32 %v3784_v53, %v2796_v52  ;;  %1445 = vmatpush.bf16.msra.mxu0 %v2541_v56  ;;  %v2590_v51 = vld [vmem:[#allocation2 + $0xd0] sm:$0xf0] }
  0x20   :  { %v2524_v59 = vld [vmem:[#allocation2 + $0x40] sm:$0xf]  ;;  %v3716_v60 = vld [vmem:[#allocation2 + $0x4c] sm:$0xf0]  ;;  %v2925_v62 = vor.u32 %v3816_v55, %v2924_v54  ;;  %1458 = vmatpush.bf16.msra.mxu1 %v2669_v57 }
  0x21   :  { %v2652_v61 = vld [vmem:[#allocation2 + $0x140] sm:$0xf]  ;;  %v3748_v63 = vld [vmem:[#allocation2 + $0x14c] sm:$0xf0]  ;;  %v2525_v4 = vor.u32 %v3716_v60, %v2524_v59  ;;  %1471 = vmatpush.bf16.msra.mxu2 %v2797_v58  ;;  %v2593_v59 = vor.u32 %v3730_v50, %v2590_v51 }
  0x22   :  { %v2780_v0 = vld [vmem:[#allocation2 + $0x240] sm:$0xf]  ;;  %v3780_v1 = vld [vmem:[#allocation2 + $0x24c] sm:$0xf0]  ;;  %v2653_v5 = vor.u32 %v3748_v63, %v2652_v61  ;;  %1484 = vmatpush.bf16.msra.mxu3 %v2925_v62  ;;  %v3726_v62 = vld [vmem:[#allocation2 + $0xa4] sm:$0xf] }
  0x23   :  { %v2908_v2 = vld [vmem:[#allocation2 + $0x340] sm:$0xf]  ;;  %v3812_v3 = vld [vmem:[#allocation2 + $0x34c] sm:$0xf0]  ;;  %v2781_v6 = vor.u32 %v3780_v1, %v2780_v0  ;;  %1446 = vmatpush.bf16.msra.mxu0 %v2525_v4  ;;  %v2574_v63 = vld [vmem:[#allocation2 + $0xb0] sm:$0xf0] }
  0x24   :  { %v2508_v7 = vld [vmem:[#allocation2 + $0x20] sm:$0xf]  ;;  %v3712_v8 = vld [vmem:[#allocation2 + $0x2c] sm:$0xf0]  ;;  %v2909_v10 = vor.u32 %v3812_v3, %v2908_v2  ;;  %1459 = vmatpush.bf16.msra.mxu1 %v2653_v5  ;;  %v59_v2 = vld [vmem:[%s4285_s0 + $0x8] sm:$0xff] }
  0x25   :  { %v2636_v9 = vld [vmem:[#allocation2 + $0x120] sm:$0xf]  ;;  %v3744_v11 = vld [vmem:[#allocation2 + $0x12c] sm:$0xf0]  ;;  %v2509_v16 = vor.u32 %v3712_v8, %v2508_v7  ;;  %1472 = vmatpush.bf16.msra.mxu2 %v2781_v6  ;;  %v302_v8 = vunpack.c.l.b16 %v59_v2 }
  0x26   :  { %v2764_v12 = vld [vmem:[#allocation2 + $0x220] sm:$0xf]  ;;  %v3776_v13 = vld [vmem:[#allocation2 + $0x22c] sm:$0xf0]  ;;  %v2637_v19 = vor.u32 %v3744_v11, %v2636_v9  ;;  %1485 = vmatpush.bf16.msra.mxu3 %v2909_v10  ;;  %v303_v10 = vunpack.c.h.b16 %v59_v2  ;;  %v2577_v11 = vor.u32 %v3726_v62, %v2574_v63 }
  0x27   :  { %v2892_v14 = vld [vmem:[#allocation2 + $0x320] sm:$0xf]  ;;  %v3808_v15 = vld [vmem:[#allocation2 + $0x32c] sm:$0xf0]  ;;  %v2765_v20 = vor.u32 %v3776_v13, %v2764_v12  ;;  %1447 = vmatpush.bf16.msra.mxu0 %v2509_v16  ;;  %v3722_v16 = vld [vmem:[#allocation2 + $0x84] sm:$0xf] }
  0x28   :  { %v2492_v17 = vld [vmem:[#allocation2] sm:$0xf]  ;;  %v3708_v18 = vld [vmem:[#allocation2 + $0xc] sm:$0xf0]  ;;  %v2893_v24 = vor.u32 %v3808_v15, %v2892_v14  ;;  %1460 = vmatpush.bf16.msra.mxu1 %v2637_v19 }
  0x29   :  { %v2620_v21 = vld [vmem:[#allocation2 + $0x100] sm:$0xf]  ;;  %v3740_v22 = vld [vmem:[#allocation2 + $0x10c] sm:$0xf0]  ;;  %v2493_v31 = vor.u32 %v3708_v18, %v2492_v17  ;;  %1473 = vmatpush.bf16.msra.mxu2 %v2765_v20  ;;  %v2558_v17 = vld [vmem:[#allocation2 + $0x90] sm:$0xf0]  ;;  %v4131_v18 = vpack.c.b16 %v302_v8, %v302_v8  ;;  %v4135_v20 = vpack.c.b16 %v303_v10, %v303_v10 }
  0x2a   :  { %v2748_v23 = vld [vmem:[#allocation2 + $0x200] sm:$0xf]  ;;  %v3772_v25 = vld [vmem:[#allocation2 + $0x20c] sm:$0xf0]  ;;  %v2621_v35 = vor.u32 %v3740_v22, %v2620_v21  ;;  %1486 = vmatpush.bf16.msra.mxu3 %v2893_v24  ;;  %v3766_v8 = vld [vmem:[#allocation2 + $0x1e4] sm:$0xf] }
  0x2b   :  { %v2876_v26 = vld [vmem:[#allocation2 + $0x300] sm:$0xf]  ;;  %v3804_v27 = vld [vmem:[#allocation2 + $0x30c] sm:$0xf0]  ;;  %v2749_v36 = vor.u32 %v3772_v25, %v2748_v23  ;;  %1448 = vmatpush.bf16.msra.mxu0 %v2493_v31  ;;  %v3798_v10 = vld [vmem:[#allocation2 + $0x2e4] sm:$0xf] }
  0x2c   :  { %v3116_v28 = vld [vmem:[#allocation2 + $0x4e0] sm:$0xf]  ;;  %v3864_v29 = vld [vmem:[#allocation2 + $0x4ec] sm:$0xf0]  ;;  %v2877_v39 = vor.u32 %v3804_v27, %v2876_v26  ;;  %1461 = vmatpush.bf16.msra.mxu1 %v2621_v35 }
  0x2d   :  { %v3244_v30 = vld [vmem:[#allocation2 + $0x5e0] sm:$0xf]  ;;  %v3896_v32 = vld [vmem:[#allocation2 + $0x5ec] sm:$0xf0]  ;;  %v3117_v40 = vor.u32 %v3864_v29, %v3116_v28  ;;  %1474 = vmatpush.bf16.msra.mxu2 %v2749_v36  ;;  %v2561_v28 = vor.u32 %v3722_v16, %v2558_v17 }
  0x2e   :  { %v3372_v33 = vld [vmem:[#allocation2 + $0x6e0] sm:$0xf]  ;;  %v3928_v34 = vld [vmem:[#allocation2 + $0x6ec] sm:$0xf0]  ;;  %v3245_v41 = vor.u32 %v3896_v32, %v3244_v30  ;;  %1487 = vmatpush.bf16.msra.mxu3 %v2877_v39  ;;  %v3718_v32 = vld [vmem:[#allocation2 + $0x64] sm:$0xf] }
  0x2f   :  { %v3373_v42 = vor.u32 %v3928_v34, %v3372_v33  ;;  %v3100_v43 = vld [vmem:[#allocation2 + $0x4c0] sm:$0xf]  ;;  %v3860_v44 = vld [vmem:[#allocation2 + $0x4cc] sm:$0xf0]  ;;  %1493 = vmatpush.bf16.msrb.mxu0 %v3117_v40  ;;  %v2542_v33 = vld [vmem:[#allocation2 + $0x70] sm:$0xf0] }
  0x30   :  { %v3228_v45 = vld [vmem:[#allocation2 + $0x5c0] sm:$0xf]  ;;  %v3892_v47 = vld [vmem:[#allocation2 + $0x5cc] sm:$0xf0]  ;;  %v3101_v52 = vor.u32 %v3860_v44, %v3100_v43  ;;  %1506 = vmatpush.bf16.msrb.mxu1 %v3245_v41  ;;  %1475 = vmatmul.bf16.vlgmr.msra.gmra.mxu2 %v4131_v18  ;;  %v2545_v40 = vor.u32 %v3718_v32, %v2542_v33  ;;  %v3714_v44 = vld [vmem:[#allocation2 + $0x44] sm:$0xf] }
  0x31   :  { %v3356_v48 = vld [vmem:[#allocation2 + $0x6c0] sm:$0xf]  ;;  %v3924_v49 = vld [vmem:[#allocation2 + $0x6cc] sm:$0xf0]  ;;  %1519 = vmatpush.bf16.msrb.mxu2 %v3373_v42  ;;  %v3229_v54 = vor.u32 %v3892_v47, %v3228_v45  ;;  %1488 = vmatmul.bf16.vlgmr.msra.gmra.mxu3 %v4135_v20  ;;  %v2526_v45 = vld [vmem:[#allocation2 + $0x50] sm:$0xf0] }
  0x32   :  { %v3084_v53 = vld [vmem:[#allocation2 + $0x4a0] sm:$0xf]  ;;  %v3357_v55 = vor.u32 %v3924_v49, %v3356_v48  ;;  %v3856_v56 = vld [vmem:[#allocation2 + $0x4ac] sm:$0xf0]  ;;  %1532 = vmatpush.bf16.msrb.mxu3 %v2609_v46  ;;  %v3794_v32 = vld [vmem:[#allocation2 + $0x2c4] sm:$0xf] }
  0x33   :  { %v3212_v57 = vld [vmem:[#allocation2 + $0x5a0] sm:$0xf]  ;;  %v3888_v58 = vld [vmem:[#allocation2 + $0x5ac] sm:$0xf0]  ;;  %1494 = vmatpush.bf16.msrb.mxu0 %v3101_v52  ;;  %v3085_v0 = vor.u32 %v3856_v56, %v3084_v53  ;;  %v2529_v52 = vor.u32 %v3714_v44, %v2526_v45  ;;  %v3710_v56 = vld [vmem:[#allocation2 + $0x24] sm:$0xf] }
  0x34   :  { %v3340_v60 = vld [vmem:[#allocation2 + $0x6a0] sm:$0xf]  ;;  %v3920_v61 = vld [vmem:[#allocation2 + $0x6ac] sm:$0xf0]  ;;  %v3213_v1 = vor.u32 %v3888_v58, %v3212_v57  ;;  %1507 = vmatpush.bf16.msrb.mxu1 %v3229_v54  ;;  %v2510_v57 = vld [vmem:[#allocation2 + $0x30] sm:$0xf0] }
  0x35   :  { %v58_v3 = vld [vmem:[%s4285_s0] sm:$0xff]  ;;  %1520 = vmatpush.bf16.msrb.mxu2 %v3357_v55  ;;  %v3341_v4 = vor.u32 %v3920_v61, %v3340_v60  ;;  %v3852_v6 = vld [vmem:[#allocation2 + $0x48c] sm:$0xf0] }
  0x36   :  { %v3068_v5 = vld [vmem:[#allocation2 + $0x480] sm:$0xf]  ;;  %v300_v9 = vunpack.c.l.b16 %v58_v3  ;;  %1533 = vmatpush.bf16.msrb.mxu3 %v2593_v59  ;;  %v3884_v12 = vld [vmem:[#allocation2 + $0x58c] sm:$0xf0]  ;;  %v301_v15 = vunpack.c.h.b16 %v58_v3  ;;  %v61_v3 = vld [vmem:[%s4285_s0 + $0x18] sm:$0xf] }
  0x37   :  { %v3196_v7 = vld [vmem:[#allocation2 + $0x580] sm:$0xf]  ;;  %v3916_v14 = vld [vmem:[#allocation2 + $0x68c] sm:$0xf0]  ;;  %1495 = vmatpush.bf16.msrb.mxu0 %v3085_v0  ;;  %v3069_v21 = vor.u32 %v3852_v6, %v3068_v5  ;;  %v3706_v5 = vld [vmem:[#allocation2 + $0x4] sm:$0xf] }
  0x38   :  { %v3324_v13 = vld [vmem:[#allocation2 + $0x680] sm:$0xf]  ;;  %v4133_v19 = vpack.c.b16 %v300_v9, %v300_v9  ;;  %v4137_v22 = vpack.c.b16 %v301_v15, %v301_v15  ;;  %1508 = vmatpush.bf16.msrb.mxu1 %v3213_v1  ;;  %v3197_v23 = vor.u32 %v3884_v12, %v3196_v7  ;;  %v3848_v26 = vld [vmem:[#allocation2 + $0x46c] sm:$0xf0]  ;;  %v2494_v6 = vld [vmem:[#allocation2 + $0x10] sm:$0xf0]  ;;  %v306_v15 = vunpack.c.l.b16 %v61_v3 }
  0x39   :  { %1521 = vmatpush.bf16.msrb.mxu2 %v3341_v4  ;;  %v3325_v24 = vor.u32 %v3916_v14, %v3324_v13  ;;  %v3052_v25 = vld [vmem:[#allocation2 + $0x460] sm:$0xf]  ;;  %v3880_v29 = vld [vmem:[#allocation2 + $0x56c] sm:$0xf0]  ;;  %v2513_v4 = vor.u32 %v3710_v56, %v2510_v57  ;;  %v2734_v9 = vld [vmem:[#allocation2 + $0x1f0] sm:$0xf0] }
  0x3a   :  { %v3180_v27 = vld [vmem:[#allocation2 + $0x560] sm:$0xf]  ;;  %1534 = vmatpush.bf16.msrb.mxu3 %v2577_v11  ;;  %v3912_v31 = vld [vmem:[#allocation2 + $0x66c] sm:$0xf0]  ;;  %1449 = vmatmul.bf16.vlgmr.msra.gmra.mxu0 %v4133_v19  ;;  %v3053_v34 = vor.u32 %v3848_v26, %v3052_v25  ;;  %v2862_v12 = vld [vmem:[#allocation2 + $0x2f0] sm:$0xf0]  ;;  %v2497_v26 = vor.u32 %v3706_v5, %v2494_v6 }
  0x3b   :  { %v3308_v30 = vld [vmem:[#allocation2 + $0x660] sm:$0xf]  ;;  %1496 = vmatpush.bf16.msrb.mxu0 %v3069_v21  ;;  %1462 = vmatmul.bf16.vlgmr.msra.gmra.mxu1 %v4137_v22  ;;  %v3181_v35 = vor.u32 %v3880_v29, %v3180_v27  ;;  %v3844_v38 = vld [vmem:[#allocation2 + $0x44c] sm:$0xf0]  ;;  %v3830_v13 = vld [vmem:[#allocation2 + $0x3e4] sm:$0xf]  ;;  %v2737_v27 = vor.u32 %v3766_v8, %v2734_v9 }
  0x3c   :  { %1509 = vmatpush.bf16.msrb.mxu1 %v3197_v23  ;;  %v3309_v36 = vor.u32 %v3912_v31, %v3308_v30  ;;  %v3036_v37 = vld [vmem:[#allocation2 + $0x440] sm:$0xf]  ;;  %v3876_v41 = vld [vmem:[#allocation2 + $0x54c] sm:$0xf0]  ;;  %v2990_v14 = vld [vmem:[#allocation2 + $0x3f0] sm:$0xf0] }
  0x3d   :  { %1522 = vmatpush.bf16.msrb.mxu2 %v3325_v24  ;;  %v3164_v39 = vld [vmem:[#allocation2 + $0x540] sm:$0xf]  ;;  %v3908_v43 = vld [vmem:[#allocation2 + $0x64c] sm:$0xf0]  ;;  %v3037_v46 = vor.u32 %v3844_v38, %v3036_v37  ;;  %v3862_v21 = vld [vmem:[#allocation2 + $0x4e4] sm:$0xf]  ;;  %v2993_v29 = vor.u32 %v3830_v13, %v2990_v14  ;;  %v4149_v37 = vpack.c.b16 %v306_v15, %v306_v15 }
  0x3e   :  { %1535 = vmatpush.bf16.msrb.mxu3 %v2561_v28  ;;  %v3292_v42 = vld [vmem:[#allocation2 + $0x640] sm:$0xf]  ;;  %v3165_v47 = vor.u32 %v3876_v41, %v3164_v39  ;;  %v3840_v50 = vld [vmem:[#allocation2 + $0x42c] sm:$0xf0]  ;;  %v3118_v23 = vld [vmem:[#allocation2 + $0x4f0] sm:$0xf0]  ;;  %v2865_v28 = vor.u32 %v3798_v10, %v2862_v12 }
  0x3f   :  { %1497 = vmatpush.bf16.msrb.mxu0 %v3053_v34  ;;  %v3293_v48 = vor.u32 %v3908_v43, %v3292_v42  ;;  %v3020_v49 = vld [vmem:[#allocation2 + $0x420] sm:$0xf]  ;;  %v3872_v53 = vld [vmem:[#allocation2 + $0x52c] sm:$0xf0]  ;;  %v3762_v30 = vld [vmem:[#allocation2 + $0x1c4] sm:$0xf]  ;;  %v3121_v33 = vor.u32 %v3862_v21, %v3118_v23 }
  0x40   :  { %1510 = vmatpush.bf16.msrb.mxu1 %v3181_v35  ;;  %v3148_v51 = vld [vmem:[#allocation2 + $0x520] sm:$0xf]  ;;  %v3904_v55 = vld [vmem:[#allocation2 + $0x62c] sm:$0xf0]  ;;  %v3021_v59 = vor.u32 %v3840_v50, %v3020_v49  ;;  %v2718_v31 = vld [vmem:[#allocation2 + $0x1d0] sm:$0xf0] }
  0x41   :  { %1523 = vmatpush.bf16.msrb.mxu2 %v3309_v36  ;;  %v3276_v54 = vld [vmem:[#allocation2 + $0x620] sm:$0xf]  ;;  %v3836_v60 = vld [vmem:[#allocation2 + $0x40c] sm:$0xf0]  ;;  %v3149_v63 = vor.u32 %v3872_v53, %v3148_v51  ;;  %v2846_v34 = vld [vmem:[#allocation2 + $0x2d0] sm:$0xf0]  ;;  %v2721_v42 = vor.u32 %v3762_v30, %v2718_v31 }
  0x42   :  { %1536 = vmatpush.bf16.msrb.mxu3 %v2545_v40  ;;  %v3004_v58 = vld [vmem:[#allocation2 + $0x400] sm:$0xf]  ;;  %v3868_v62 = vld [vmem:[#allocation2 + $0x50c] sm:$0xf0]  ;;  %v3277_v0 = vor.u32 %v3904_v55, %v3276_v54  ;;  %v3826_v35 = vld [vmem:[#allocation2 + $0x3c4] sm:$0xf]  ;;  %v2849_v43 = vor.u32 %v3794_v32, %v2846_v34 }
  0x43   :  { %1498 = vmatpush.bf16.msrb.mxu0 %v3037_v46  ;;  %v3132_v61 = vld [vmem:[#allocation2 + $0x500] sm:$0xf]  ;;  %v3900_v2 = vld [vmem:[#allocation2 + $0x60c] sm:$0xf0]  ;;  %v3005_v11 = vor.u32 %v3836_v60, %v3004_v58  ;;  %v2974_v36 = vld [vmem:[#allocation2 + $0x3d0] sm:$0xf0] }
  0x44   :  { %1511 = vmatpush.bf16.msrb.mxu1 %v3165_v47  ;;  %v3260_v1 = vld [vmem:[#allocation2 + $0x600] sm:$0xf]  ;;  %v60_v7 = vld [vmem:[%s4285_s0 + $0x10] sm:$0xff]  ;;  %v3133_v16 = vor.u32 %v3868_v62, %v3132_v61  ;;  %v3858_v38 = vld [vmem:[#allocation2 + $0x4c4] sm:$0xf]  ;;  %v2977_v44 = vor.u32 %v3826_v35, %v2974_v36 }
  0x45   :  { %1524 = vmatpush.bf16.msrb.mxu2 %v3293_v48  ;;  %v3261_v17 = vor.u32 %v3900_v2, %v3260_v1  ;;  %v304_v24 = vunpack.c.l.b16 %v60_v7  ;;  %v305_v25 = vunpack.c.h.b16 %v60_v7  ;;  %v3102_v39 = vld [vmem:[#allocation2 + $0x4d0] sm:$0xf0]  ;;  %v3758_v45 = vld [vmem:[#allocation2 + $0x1a4] sm:$0xf] }
  0x46   :  { %1537 = vmatpush.bf16.msrb.mxu3 %v2529_v52  ;;  %v2702_v46 = vld [vmem:[#allocation2 + $0x1b0] sm:$0xf0]  ;;  %v3790_v47 = vld [vmem:[#allocation2 + $0x2a4] sm:$0xf]  ;;  %v3105_v48 = vor.u32 %v3858_v38, %v3102_v39 }
  0x47   :  { %1499 = vmatpush.bf16.msrb.mxu0 %v3021_v59  ;;  %v4151_v40 = vpack.c.b16 %v304_v24, %v304_v24  ;;  %v4153_v41 = vpack.c.b16 %v305_v25, %v305_v25  ;;  %v2830_v49 = vld [vmem:[#allocation2 + $0x2b0] sm:$0xf0]  ;;  %v3822_v50 = vld [vmem:[#allocation2 + $0x3a4] sm:$0xf]  ;;  %v2705_v54 = vor.u32 %v3758_v45, %v2702_v46 }
  0x48   :  { %1512 = vmatpush.bf16.msrb.mxu1 %v3149_v63  ;;  %v2958_v51 = vld [vmem:[#allocation2 + $0x3b0] sm:$0xf0]  ;;  %v3854_v52 = vld [vmem:[#allocation2 + $0x4a4] sm:$0xf]  ;;  %v2833_v55 = vor.u32 %v3790_v47, %v2830_v49 }
  0x49   :  { %1525 = vmatpush.bf16.msrb.mxu2 %v3277_v0  ;;  %v3086_v53 = vld [vmem:[#allocation2 + $0x4b0] sm:$0xf0]  ;;  %v2961_v56 = vor.u32 %v3822_v50, %v2958_v51  ;;  %v3754_v57 = vld [vmem:[#allocation2 + $0x184] sm:$0xf] }
  0x4a   :  { %1538 = vmatpush.bf16.msrb.mxu3 %v2513_v4  ;;  %v2686_v58 = vld [vmem:[#allocation2 + $0x190] sm:$0xf0]  ;;  %v3786_v59 = vld [vmem:[#allocation2 + $0x284] sm:$0xf]  ;;  %v3089_v60 = vor.u32 %v3854_v52, %v3086_v53 }
  0x4b   :  { %1500 = vmatpush.bf16.msrb.mxu0 %v3005_v11  ;;  %v2814_v61 = vld [vmem:[#allocation2 + $0x290] sm:$0xf0]  ;;  %v3818_v62 = vld [vmem:[#allocation2 + $0x384] sm:$0xf]  ;;  %v2689_v2 = vor.u32 %v3754_v57, %v2686_v58 }
  0x4c   :  { %1513 = vmatpush.bf16.msrb.mxu1 %v3133_v16  ;;  %v2942_v63 = vld [vmem:[#allocation2 + $0x390] sm:$0xf0]  ;;  %v3850_v0 = vld [vmem:[#allocation2 + $0x484] sm:$0xf]  ;;  %v2817_v3 = vor.u32 %v3786_v59, %v2814_v61 }
  0x4d   :  { %1526 = vmatpush.bf16.msrb.mxu2 %v3261_v17  ;;  %v3070_v1 = vld [vmem:[#allocation2 + $0x490] sm:$0xf0]  ;;  %v2945_v4 = vor.u32 %v3818_v62, %v2942_v63  ;;  %v3750_v5 = vld [vmem:[#allocation2 + $0x164] sm:$0xf]  ;;  %v2612_v62 = vld [vmem:[#allocation2 + $0xe8] sm:$0xf] }
  0x4e   :  { %1539 = vmatpush.bf16.msrb.mxu3 %v2497_v26  ;;  %1501 = vmatmul.bf16.vlgmr.msrb.gmra.mxu0 %v4151_v40  ;;  %v2670_v6 = vld [vmem:[#allocation2 + $0x170] sm:$0xf0]  ;;  %v3782_v7 = vld [vmem:[#allocation2 + $0x264] sm:$0xf]  ;;  %v3073_v8 = vor.u32 %v3850_v0, %v3070_v1  ;;  %v3737_v63 = vld [vmem:[#allocation2 + $0xf4] sm:$0xf0] }
  0x4f   :  { %1545 = vmatpush.bf16.msra.mxu0 %v2737_v27  ;;  %1514 = vmatmul.bf16.vlgmr.msrb.gmra.mxu1 %v4153_v41  ;;  %v2798_v9 = vld [vmem:[#allocation2 + $0x270] sm:$0xf0]  ;;  %v3814_v10 = vld [vmem:[#allocation2 + $0x364] sm:$0xf]  ;;  %v2673_v14 = vor.u32 %v3750_v5, %v2670_v6 }
  0x50   :  { %1558 = vmatpush.bf16.msra.mxu1 %v2865_v28  ;;  %1527 = vmatmul.bf16.vlgmr.msrb.gmra.mxu2 %v4149_v37  ;;  %v2926_v11 = vld [vmem:[#allocation2 + $0x370] sm:$0xf0]  ;;  %v3846_v12 = vld [vmem:[#allocation2 + $0x464] sm:$0xf]  ;;  %v2801_v15 = vor.u32 %v3782_v7, %v2798_v9  ;;  %v2613_v7 = vor.u32 %v3737_v63, %v2612_v62 }
  0x51   :  { %1571 = vmatpush.bf16.msra.mxu2 %v2993_v29  ;;  %1540 = vmatmul.bf16.vlgmr.msrb.gmra.mxu3 %v4133_v19  ;;  %v3054_v13 = vld [vmem:[#allocation2 + $0x470] sm:$0xf0]  ;;  %v2929_v16 = vor.u32 %v3814_v10, %v2926_v11  ;;  %v3746_v17 = vld [vmem:[#allocation2 + $0x144] sm:$0xf] }
  0x52   :  { %1584 = vmatpush.bf16.msra.mxu3 %v3121_v33  ;;  %v2654_v21 = vld [vmem:[#allocation2 + $0x150] sm:$0xf0]  ;;  %v3778_v23 = vld [vmem:[#allocation2 + $0x244] sm:$0xf]  ;;  %v3057_v24 = vor.u32 %v3846_v12, %v3054_v13  ;;  %v2596_v13 = vld [vmem:[#allocation2 + $0xc8] sm:$0xf] }
  0x53   :  { %1546 = vmatpush.bf16.msra.mxu0 %v2721_v42  ;;  %v2782_v25 = vld [vmem:[#allocation2 + $0x250] sm:$0xf0]  ;;  %v3810_v26 = vld [vmem:[#allocation2 + $0x344] sm:$0xf]  ;;  %v2657_v30 = vor.u32 %v3746_v17, %v2654_v21 }
  0x54   :  { %1559 = vmatpush.bf16.msra.mxu1 %v2849_v43  ;;  %v2910_v27 = vld [vmem:[#allocation2 + $0x350] sm:$0xf0]  ;;  %v3842_v28 = vld [vmem:[#allocation2 + $0x444] sm:$0xf]  ;;  %v2785_v31 = vor.u32 %v3778_v23, %v2782_v25 }
  0x55   :  { %1572 = vmatpush.bf16.msra.mxu2 %v2977_v44  ;;  %v3038_v29 = vld [vmem:[#allocation2 + $0x450] sm:$0xf0]  ;;  %v2913_v32 = vor.u32 %v3810_v26, %v2910_v27  ;;  %v3742_v33 = vld [vmem:[#allocation2 + $0x124] sm:$0xf] }
  0x56   :  { %1585 = vmatpush.bf16.msra.mxu3 %v3105_v48  ;;  %v2638_v34 = vld [vmem:[#allocation2 + $0x130] sm:$0xf0]  ;;  %v3774_v35 = vld [vmem:[#allocation2 + $0x224] sm:$0xf]  ;;  %v3041_v36 = vor.u32 %v3842_v28, %v3038_v29  ;;  %v2580_v29 = vld [vmem:[#allocation2 + $0xa8] sm:$0xf] }
  0x57   :  { %1547 = vmatpush.bf16.msra.mxu0 %v2705_v54  ;;  %v2766_v38 = vld [vmem:[#allocation2 + $0x230] sm:$0xf0]  ;;  %v3806_v39 = vld [vmem:[#allocation2 + $0x324] sm:$0xf]  ;;  %v2641_v45 = vor.u32 %v3742_v33, %v2638_v34 }
  0x58   :  { %1560 = vmatpush.bf16.msra.mxu1 %v2833_v55  ;;  %v2894_v42 = vld [vmem:[#allocation2 + $0x330] sm:$0xf0]  ;;  %v3838_v43 = vld [vmem:[#allocation2 + $0x424] sm:$0xf]  ;;  %v2769_v48 = vor.u32 %v3774_v35, %v2766_v38 }
  0x59   :  { %1573 = vmatpush.bf16.msra.mxu2 %v2961_v56  ;;  %v3022_v44 = vld [vmem:[#allocation2 + $0x430] sm:$0xf0]  ;;  %v3738_v46 = vld [vmem:[#allocation2 + $0x104] sm:$0xf]  ;;  %v2897_v49 = vor.u32 %v3806_v39, %v2894_v42 }
  0x5a   :  { %1586 = vmatpush.bf16.msra.mxu3 %v3089_v60  ;;  %v2622_v47 = vld [vmem:[#allocation2 + $0x110] sm:$0xf0]  ;;  %v3770_v50 = vld [vmem:[#allocation2 + $0x204] sm:$0xf]  ;;  %v3025_v53 = vor.u32 %v3838_v43, %v3022_v44  ;;  %v2564_v44 = vld [vmem:[#allocation2 + $0x88] sm:$0xf] }
  0x5b   :  { %1548 = vmatpush.bf16.msra.mxu0 %v2689_v2  ;;  %v2750_v51 = vld [vmem:[#allocation2 + $0x210] sm:$0xf0]  ;;  %v3802_v52 = vld [vmem:[#allocation2 + $0x304] sm:$0xf]  ;;  %v2625_v60 = vor.u32 %v3738_v46, %v2622_v47  ;;  %v2740_v2 = vld [vmem:[#allocation2 + $0x1e8] sm:$0xf] }
  0x5c   :  { %1561 = vmatpush.bf16.msra.mxu1 %v2817_v3  ;;  %v2878_v54 = vld [vmem:[#allocation2 + $0x310] sm:$0xf0]  ;;  %v3834_v55 = vld [vmem:[#allocation2 + $0x404] sm:$0xf]  ;;  %v2753_v0 = vor.u32 %v3770_v50, %v2750_v51  ;;  %v3769_v3 = vld [vmem:[#allocation2 + $0x1f4] sm:$0xf0] }
  0x5d   :  { %1574 = vmatpush.bf16.msra.mxu2 %v2945_v4  ;;  %v3006_v56 = vld [vmem:[#allocation2 + $0x410] sm:$0xf0]  ;;  %v3894_v57 = vld [vmem:[#allocation2 + $0x5e4] sm:$0xf]  ;;  %v2881_v1 = vor.u32 %v3802_v52, %v2878_v54  ;;  %v2741_v11 = vor.u32 %v3769_v3, %v2740_v2  ;;  %v2692_v46 = vld [vmem:[#allocation2 + $0x188] sm:$0xf] }
  0x5e   :  { %1587 = vmatpush.bf16.msra.mxu3 %v3073_v8  ;;  %v3246_v58 = vld [vmem:[#allocation2 + $0x5f0] sm:$0xf0]  ;;  %v3926_v59 = vld [vmem:[#allocation2 + $0x6e4] sm:$0xf]  ;;  %v3009_v4 = vor.u32 %v3834_v55, %v3006_v56  ;;  %v3757_v47 = vld [vmem:[#allocation2 + $0x194] sm:$0xf0] }
  0x5f   :  { %1549 = vmatpush.bf16.msra.mxu0 %v2673_v14  ;;  %v3374_v61 = vld [vmem:[#allocation2 + $0x6f0] sm:$0xf0]  ;;  %v3249_v5 = vor.u32 %v3894_v57, %v3246_v58  ;;  %v3890_v8 = vld [vmem:[#allocation2 + $0x5c4] sm:$0xf]  ;;  %v3733_v14 = vld [vmem:[#allocation2 + $0xd4] sm:$0xf0]  ;;  %v2693_v54 = vor.u32 %v3757_v47, %v2692_v46 }
  0x60   :  { %1562 = vmatpush.bf16.msra.mxu1 %v2801_v15  ;;  %v3377_v6 = vor.u32 %v3926_v59, %v3374_v61  ;;  %v3230_v9 = vld [vmem:[#allocation2 + $0x5d0] sm:$0xf0]  ;;  %v3922_v10 = vld [vmem:[#allocation2 + $0x6c4] sm:$0xf]  ;;  %v2724_v15 = vld [vmem:[#allocation2 + $0x1c8] sm:$0xf]  ;;  %v2597_v23 = vor.u32 %v3733_v14, %v2596_v13 }
  0x61   :  { %1575 = vmatpush.bf16.msra.mxu2 %v2929_v16  ;;  %v3358_v12 = vld [vmem:[#allocation2 + $0x6d0] sm:$0xf0]  ;;  %v3765_v16 = vld [vmem:[#allocation2 + $0x1d4] sm:$0xf0]  ;;  %v3233_v17 = vor.u32 %v3890_v8, %v3230_v9  ;;  %v3918_v26 = vld [vmem:[#allocation2 + $0x6a4] sm:$0xf] }
  0x62   :  { %1588 = vmatpush.bf16.msra.mxu3 %v3057_v24  ;;  %v3361_v21 = vor.u32 %v3922_v10, %v3358_v12  ;;  %v3886_v24 = vld [vmem:[#allocation2 + $0x5a4] sm:$0xf]  ;;  %v3214_v25 = vld [vmem:[#allocation2 + $0x5b0] sm:$0xf0]  ;;  %v2725_v27 = vor.u32 %v3765_v16, %v2724_v15  ;;  %v2548_v56 = vld [vmem:[#allocation2 + $0x68] sm:$0xf] }
  0x63   :  { %1550 = vmatpush.bf16.msra.mxu0 %v2657_v30  ;;  %v3342_v28 = vld [vmem:[#allocation2 + $0x6b0] sm:$0xf0]  ;;  %v3729_v30 = vld [vmem:[#allocation2 + $0xb4] sm:$0xf0]  ;;  %v3217_v33 = vor.u32 %v3886_v24, %v3214_v25  ;;  %v3914_v39 = vld [vmem:[#allocation2 + $0x684] sm:$0xf] }
  0x64   :  { %1563 = vmatpush.bf16.msra.mxu1 %v2785_v31  ;;  %v2708_v31 = vld [vmem:[#allocation2 + $0x1a8] sm:$0xf]  ;;  %v3345_v34 = vor.u32 %v3918_v26, %v3342_v28  ;;  %v2581_v35 = vor.u32 %v3729_v30, %v2580_v29  ;;  %v3198_v38 = vld [vmem:[#allocation2 + $0x590] sm:$0xf0]  ;;  %v3878_v51 = vld [vmem:[#allocation2 + $0x564] sm:$0xf] }
  0x65   :  { %1576 = vmatpush.bf16.msra.mxu2 %v2913_v32  ;;  %v3761_v32 = vld [vmem:[#allocation2 + $0x1b4] sm:$0xf0]  ;;  %v3326_v43 = vld [vmem:[#allocation2 + $0x690] sm:$0xf0]  ;;  %v2676_v58 = vld [vmem:[#allocation2 + $0x168] sm:$0xf] }
  0x66   :  { %1589 = vmatpush.bf16.msra.mxu3 %v3041_v36  ;;  %v3882_v36 = vld [vmem:[#allocation2 + $0x584] sm:$0xf]  ;;  %v2709_v42 = vor.u32 %v3761_v32, %v2708_v31  ;;  %v3182_v52 = vld [vmem:[#allocation2 + $0x570] sm:$0xf0]  ;;  %v3721_v57 = vld [vmem:[#allocation2 + $0x74] sm:$0xf0] }
  0x67   :  { %1551 = vmatpush.bf16.msra.mxu0 %v2641_v45  ;;  %v3725_v45 = vld [vmem:[#allocation2 + $0x94] sm:$0xf0]  ;;  %v3310_v55 = vld [vmem:[#allocation2 + $0x670] sm:$0xf0]  ;;  %v2549_v62 = vor.u32 %v3721_v57, %v2548_v56  ;;  %v3874_v63 = vld [vmem:[#allocation2 + $0x544] sm:$0xf] }
  0x68   :  { %1564 = vmatpush.bf16.msra.mxu1 %v2769_v48  ;;  %v3201_v48 = vor.u32 %v3882_v36, %v3198_v38  ;;  %v2565_v50 = vor.u32 %v3725_v45, %v2564_v44  ;;  %v3753_v59 = vld [vmem:[#allocation2 + $0x174] sm:$0xf0]  ;;  %v3294_v3 = vld [vmem:[#allocation2 + $0x650] sm:$0xf0]  ;;  %v3902_v13 = vld [vmem:[#allocation2 + $0x624] sm:$0xf] }
  0x69   :  { %1577 = vmatpush.bf16.msra.mxu2 %v2897_v49  ;;  %v3329_v49 = vor.u32 %v3914_v39, %v3326_v43  ;;  %v2677_v2 = vor.u32 %v3753_v59, %v2676_v58  ;;  %v3150_v12 = vld [vmem:[#allocation2 + $0x530] sm:$0xf0]  ;;  %v2516_v16 = vld [vmem:[#allocation2 + $0x28] sm:$0xf]  ;;  %v3866_v25 = vld [vmem:[#allocation2 + $0x504] sm:$0xf] }
  0x6a   :  { %1590 = vmatpush.bf16.msra.mxu3 %v3025_v53  ;;  %v3910_v53 = vld [vmem:[#allocation2 + $0x664] sm:$0xf]  ;;  %v3278_v15 = vld [vmem:[#allocation2 + $0x630] sm:$0xf0]  ;;  %v2500_v31 = vld [vmem:[#allocation2 + $0x8] sm:$0xf] }
  0x6b   :  { %1552 = vmatpush.bf16.msra.mxu0 %v2625_v60  ;;  %v3185_v60 = vor.u32 %v3878_v51, %v3182_v52  ;;  %v3313_v61 = vor.u32 %v3910_v53, %v3310_v55  ;;  %v3134_v26 = vld [vmem:[#allocation2 + $0x510] sm:$0xf0]  ;;  %v3898_v29 = vld [vmem:[#allocation2 + $0x604] sm:$0xf]  ;;  %v2868_v36 = vld [vmem:[#allocation2 + $0x2e8] sm:$0xf] }
  0x6c   :  { %1565 = vmatpush.bf16.msra.mxu1 %v2753_v0  ;;  %v3166_v0 = vld [vmem:[#allocation2 + $0x550] sm:$0xf0]  ;;  %v3801_v38 = vld [vmem:[#allocation2 + $0x2f4] sm:$0xf0]  ;;  %v2996_v39 = vld [vmem:[#allocation2 + $0x3e8] sm:$0xf] }
  0x6d   :  { %1578 = vmatpush.bf16.msra.mxu2 %v2881_v1  ;;  %v3906_v1 = vld [vmem:[#allocation2 + $0x644] sm:$0xf]  ;;  %v3169_v8 = vor.u32 %v3874_v63, %v3166_v0  ;;  %v3262_v30 = vld [vmem:[#allocation2 + $0x610] sm:$0xf0]  ;;  %v3833_v43 = vld [vmem:[#allocation2 + $0x3f4] sm:$0xf0]  ;;  %v2869_v51 = vor.u32 %v3801_v38, %v2868_v36 }
  0x6e   :  { %1591 = vmatpush.bf16.msra.mxu3 %v3009_v4  ;;  %1553 = vmatmul.bf16.vlgmr.msra.gmra.mxu0 %v4137_v22  ;;  %v2532_v4 = vld [vmem:[#allocation2 + $0x48] sm:$0xf]  ;;  %v3297_v9 = vor.u32 %v3906_v1, %v3294_v3  ;;  %v3865_v45 = vld [vmem:[#allocation2 + $0x4f4] sm:$0xf0]  ;;  %v3265_v46 = vor.u32 %v3898_v29, %v3262_v30  ;;  %v2997_v52 = vor.u32 %v3833_v43, %v2996_v39 }
  0x6f   :  { %1597 = vmatpush.bf16.msrb.mxu0 %v3249_v5  ;;  %1566 = vmatmul.bf16.vlgmr.msra.gmra.mxu1 %v4131_v18  ;;  %v3717_v5 = vld [vmem:[#allocation2 + $0x54] sm:$0xf0]  ;;  %v3124_v44 = vld [vmem:[#allocation2 + $0x4e8] sm:$0xf] }
  0x70   :  { %1610 = vmatpush.bf16.msrb.mxu1 %v3377_v6  ;;  %1579 = vmatmul.bf16.vlgmr.msra.gmra.mxu2 %v4135_v20  ;;  %v2660_v6 = vld [vmem:[#allocation2 + $0x148] sm:$0xf]  ;;  %v2533_v10 = vor.u32 %v3717_v5, %v2532_v4  ;;  %v3125_v53 = vor.u32 %v3865_v45, %v3124_v44  ;;  %v3797_v55 = vld [vmem:[#allocation2 + $0x2d4] sm:$0xf0] }
  0x71   :  { %1623 = vmatpush.bf16.msrb.mxu2 %v2613_v7  ;;  %1592 = vmatmul.bf16.vlgmr.msra.gmra.mxu3 %v4151_v40  ;;  %v3749_v7 = vld [vmem:[#allocation2 + $0x154] sm:$0xf0]  ;;  %v2980_v56 = vld [vmem:[#allocation2 + $0x3c8] sm:$0xf] }
  0x72   :  { %1636 = vmatpush.bf16.msrb.mxu3 %v2741_v11  ;;  %v3870_v11 = vld [vmem:[#allocation2 + $0x524] sm:$0xf]  ;;  %v2661_v14 = vor.u32 %v3749_v7, %v2660_v6  ;;  %v3829_v58 = vld [vmem:[#allocation2 + $0x3d4] sm:$0xf0]  ;;  %v3108_v59 = vld [vmem:[#allocation2 + $0x4c8] sm:$0xf] }
  0x73   :  { %1598 = vmatpush.bf16.msrb.mxu0 %v3233_v17  ;;  %v3713_v17 = vld [vmem:[#allocation2 + $0x34] sm:$0xf0]  ;;  %v3153_v24 = vor.u32 %v3870_v11, %v3150_v12  ;;  %v2981_v0 = vor.u32 %v3829_v58, %v2980_v56  ;;  %v2964_v4 = vld [vmem:[#allocation2 + $0x3a8] sm:$0xf] }
  0x74   :  { %1611 = vmatpush.bf16.msrb.mxu1 %v3361_v21  ;;  %v2644_v21 = vld [vmem:[#allocation2 + $0x128] sm:$0xf]  ;;  %v2517_v28 = vor.u32 %v3713_v17, %v2516_v16  ;;  %v3793_v3 = vld [vmem:[#allocation2 + $0x2b4] sm:$0xf0] }
  0x75   :  { %1624 = vmatpush.bf16.msrb.mxu2 %v2597_v23  ;;  %v3745_v23 = vld [vmem:[#allocation2 + $0x134] sm:$0xf0]  ;;  %v3092_v7 = vld [vmem:[#allocation2 + $0x4a8] sm:$0xf] }
  0x76   :  { %1637 = vmatpush.bf16.msrb.mxu3 %v2725_v27  ;;  %v3281_v27 = vor.u32 %v3902_v13, %v3278_v15  ;;  %v2645_v32 = vor.u32 %v3745_v23, %v2644_v21  ;;  %v3825_v6 = vld [vmem:[#allocation2 + $0x3b4] sm:$0xf0]  ;;  %v2948_v16 = vld [vmem:[#allocation2 + $0x388] sm:$0xf] }
  0x77   :  { %1599 = vmatpush.bf16.msrb.mxu0 %v3217_v33  ;;  %v3709_v33 = vld [vmem:[#allocation2 + $0x14] sm:$0xf0]  ;;  %v2965_v12 = vor.u32 %v3825_v6, %v2964_v4  ;;  %v3076_v23 = vld [vmem:[#allocation2 + $0x488] sm:$0xf] }
  0x78   :  { %1612 = vmatpush.bf16.msrb.mxu1 %v3345_v34  ;;  %v2628_v34 = vld [vmem:[#allocation2 + $0x108] sm:$0xf]  ;;  %v2501_v47 = vor.u32 %v3709_v33, %v2500_v31  ;;  %v3789_v15 = vld [vmem:[#allocation2 + $0x294] sm:$0xf0] }
  0x79   :  { %1625 = vmatpush.bf16.msrb.mxu2 %v2581_v35  ;;  %v3741_v35 = vld [vmem:[#allocation2 + $0x114] sm:$0xf0]  ;;  %v2804_v30 = vld [vmem:[#allocation2 + $0x268] sm:$0xf] }
  0x7a   :  { %1638 = vmatpush.bf16.msrb.mxu3 %v2709_v42  ;;  %v3137_v42 = vor.u32 %v3866_v25, %v3134_v26  ;;  %v3821_v21 = vld [vmem:[#allocation2 + $0x394] sm:$0xf0]  ;;  %v3204_v25 = vld [vmem:[#allocation2 + $0x588] sm:$0xf] }
  0x7b   :  { %1600 = vmatpush.bf16.msrb.mxu0 %v3201_v48  ;;  %v3252_v48 = vld [vmem:[#allocation2 + $0x5e8] sm:$0xf]  ;;  %v3885_v26 = vld [vmem:[#allocation2 + $0x594] sm:$0xf0] }
  0x7c   :  { %1613 = vmatpush.bf16.msrb.mxu1 %v3329_v49  ;;  %v3897_v49 = vld [vmem:[#allocation2 + $0x5f4] sm:$0xf0]  ;;  %v3205_v33 = vor.u32 %v3885_v26, %v3204_v25  ;;  %v3188_v38 = vld [vmem:[#allocation2 + $0x568] sm:$0xf] }
  0x7d   :  { %1626 = vmatpush.bf16.msrb.mxu2 %v2565_v50  ;;  %v2629_v50 = vor.u32 %v3741_v35, %v2628_v34  ;;  %v3253_v57 = vor.u32 %v3897_v49, %v3252_v48  ;;  %v3785_v31 = vld [vmem:[#allocation2 + $0x274] sm:$0xf0]  ;;  %v3060_v35 = vld [vmem:[#allocation2 + $0x468] sm:$0xf] }
  0x7e   :  { %1639 = vmatpush.bf16.msrb.mxu3 %v2693_v54  ;;  %v2852_v54 = vld [vmem:[#allocation2 + $0x2c8] sm:$0xf]  ;;  %v3817_v34 = vld [vmem:[#allocation2 + $0x374] sm:$0xf0] }
  0x7f   :  { %1601 = vmatpush.bf16.msrb.mxu0 %v3185_v60  ;;  %v3861_v60 = vld [vmem:[#allocation2 + $0x4d4] sm:$0xf0]  ;;  %v2853_v63 = vor.u32 %v3797_v55, %v2852_v54  ;;  %v2788_v45 = vld [vmem:[#allocation2 + $0x248] sm:$0xf] }
  0x80   :  { %1614 = vmatpush.bf16.msrb.mxu1 %v3313_v61  ;;  %v3236_v61 = vld [vmem:[#allocation2 + $0x5c8] sm:$0xf]  ;;  %v3109_v1 = vor.u32 %v3861_v60, %v3108_v59  ;;  %v3849_v36 = vld [vmem:[#allocation2 + $0x474] sm:$0xf0] }
  0x81   :  { %1627 = vmatpush.bf16.msrb.mxu2 %v2549_v62  ;;  %v3893_v62 = vld [vmem:[#allocation2 + $0x5d4] sm:$0xf0]  ;;  %v3061_v44 = vor.u32 %v3849_v36, %v3060_v35  ;;  %v2900_v59 = vld [vmem:[#allocation2 + $0x328] sm:$0xf]  ;;  %v3731_v35 = vld [vmem:[#allocation2 + $0xcc] sm:$0xf] }
  0x82   :  { %1640 = vmatpush.bf16.msrb.mxu3 %v2677_v2  ;;  %v2836_v2 = vld [vmem:[#allocation2 + $0x2a8] sm:$0xf]  ;;  %v3237_v5 = vor.u32 %v3893_v62, %v3236_v61  ;;  %v3881_v39 = vld [vmem:[#allocation2 + $0x574] sm:$0xf0] }
  0x83   :  { %1602 = vmatpush.bf16.msrb.mxu0 %v3169_v8  ;;  %v3857_v8 = vld [vmem:[#allocation2 + $0x4b4] sm:$0xf0]  ;;  %v2837_v11 = vor.u32 %v3793_v3, %v2836_v2  ;;  %v3189_v48 = vor.u32 %v3881_v39, %v3188_v38  ;;  %v3028_v62 = vld [vmem:[#allocation2 + $0x428] sm:$0xf]  ;;  %v2598_v38 = vld [vmem:[#allocation2 + $0xd8] sm:$0xf0] }
  0x84   :  { %1615 = vmatpush.bf16.msrb.mxu1 %v3297_v9  ;;  %v3220_v9 = vld [vmem:[#allocation2 + $0x5a8] sm:$0xf]  ;;  %v3093_v13 = vor.u32 %v3857_v8, %v3092_v7  ;;  %v3813_v49 = vld [vmem:[#allocation2 + $0x354] sm:$0xf0]  ;;  %v3763_v39 = vld [vmem:[#allocation2 + $0x1cc] sm:$0xf] }
  0x85   :  { %1628 = vmatpush.bf16.msrb.mxu2 %v2533_v10  ;;  %v3889_v10 = vld [vmem:[#allocation2 + $0x5b4] sm:$0xf0]  ;;  %v2756_v3 = vld [vmem:[#allocation2 + $0x208] sm:$0xf] }
  0x86   :  { %1641 = vmatpush.bf16.msrb.mxu3 %v2661_v14  ;;  %v2820_v14 = vld [vmem:[#allocation2 + $0x288] sm:$0xf]  ;;  %v3221_v17 = vor.u32 %v3889_v10, %v3220_v9  ;;  %v3777_v58 = vld [vmem:[#allocation2 + $0x234] sm:$0xf0] }
  0x87   :  { %1603 = vmatpush.bf16.msrb.mxu0 %v3153_v24  ;;  %v3853_v24 = vld [vmem:[#allocation2 + $0x494] sm:$0xf0]  ;;  %v2884_v7 = vld [vmem:[#allocation2 + $0x308] sm:$0xf] }
  0x88   :  { %1616 = vmatpush.bf16.msrb.mxu1 %v3281_v27  ;;  %v2821_v27 = vor.u32 %v3789_v15, %v2820_v14  ;;  %v3077_v29 = vor.u32 %v3853_v24, %v3076_v23  ;;  %v3809_v61 = vld [vmem:[#allocation2 + $0x334] sm:$0xf0]  ;;  %v3012_v9 = vld [vmem:[#allocation2 + $0x408] sm:$0xf]  ;;  %v3767_v23 = vld [vmem:[#allocation2 + $0x1ec] sm:$0xf] }
  0x89   :  { %1629 = vmatpush.bf16.msrb.mxu2 %v2517_v28  ;;  %v2949_v28 = vor.u32 %v3821_v21, %v2948_v16  ;;  %v3773_v4 = vld [vmem:[#allocation2 + $0x214] sm:$0xf0]  ;;  %v3380_v14 = vld [vmem:[#allocation2 + $0x6e8] sm:$0xf]  ;;  %v3735_v16 = vld [vmem:[#allocation2 + $0xec] sm:$0xf] }
  0x8a   :  { %1642 = vmatpush.bf16.msrb.mxu3 %v2645_v32  ;;  %v2932_v32 = vld [vmem:[#allocation2 + $0x368] sm:$0xf]  ;;  %v3805_v8 = vld [vmem:[#allocation2 + $0x314] sm:$0xf0]  ;;  %v2614_v21 = vld [vmem:[#allocation2 + $0xf8] sm:$0xf0] }
  0x8b   :  { %1604 = vmatpush.bf16.msrb.mxu0 %v3137_v42  ;;  %v2805_v42 = vor.u32 %v3785_v31, %v2804_v30  ;;  %v2933_v43 = vor.u32 %v3817_v34, %v2932_v32  ;;  %v3929_v15 = vld [vmem:[#allocation2 + $0x6f4] sm:$0xf0]  ;;  %v2742_v24 = vld [vmem:[#allocation2 + $0x1f8] sm:$0xf0]  ;;  %v2885_v25 = vor.u32 %v3805_v8, %v2884_v7  ;;  %v2617_v31 = vor.u32 %v3735_v16, %v2614_v21  ;;  %v3316_v8 = vld [vmem:[#allocation2 + $0x668] sm:$0xf] }
  0x8c   :  { %1617 = vmatpush.bf16.msrb.mxu1 %v3265_v46  ;;  %v3781_v46 = vld [vmem:[#allocation2 + $0x254] sm:$0xf0]  ;;  %v3381_v30 = vor.u32 %v3929_v15, %v3380_v14  ;;  %v2745_v32 = vor.u32 %v3767_v23, %v2742_v24  ;;  %v2678_v14 = vld [vmem:[#allocation2 + $0x178] sm:$0xf0]  ;;  %v3783_v15 = vld [vmem:[#allocation2 + $0x26c] sm:$0xf] }
  0x8d   :  { %1630 = vmatpush.bf16.msrb.mxu2 %v2501_v47  ;;  %v2916_v47 = vld [vmem:[#allocation2 + $0x348] sm:$0xf]  ;;  %v2789_v54 = vor.u32 %v3781_v46, %v2788_v45  ;;  %v3925_v34 = vld [vmem:[#allocation2 + $0x6d4] sm:$0xf0]  ;;  %v2601_v46 = vor.u32 %v3731_v35, %v2598_v38  ;;  %v2806_v16 = vld [vmem:[#allocation2 + $0x278] sm:$0xf0] }
  0x8e   :  { %1643 = vmatpush.bf16.msrb.mxu3 %v2629_v50  ;;  %1605 = vmatmul.bf16.vlgmr.msrb.gmra.mxu0 %v4153_v41  ;;  %v3044_v50 = vld [vmem:[#allocation2 + $0x448] sm:$0xf]  ;;  %v2917_v55 = vor.u32 %v3813_v49, %v2916_v47  ;;  %v3921_v49 = vld [vmem:[#allocation2 + $0x6b4] sm:$0xf0] }
  0x8f   :  { %1649 = vmatpush.bf16.msra.mxu0 %v2869_v51  ;;  %1618 = vmatmul.bf16.vlgmr.msrb.gmra.mxu1 %v4149_v37  ;;  %v3845_v51 = vld [vmem:[#allocation2 + $0x454] sm:$0xf0]  ;;  %v3300_v24 = vld [vmem:[#allocation2 + $0x648] sm:$0xf] }
  0x90   :  { %1662 = vmatpush.bf16.msra.mxu1 %v2997_v52  ;;  %1631 = vmatmul.bf16.vlgmr.msrb.gmra.mxu2 %v4133_v19  ;;  %v3172_v52 = vld [vmem:[#allocation2 + $0x548] sm:$0xf]  ;;  %v3045_v56 = vor.u32 %v3845_v51, %v3044_v50  ;;  %v3727_v50 = vld [vmem:[#allocation2 + $0xac] sm:$0xf] }
  0x91   :  { %1675 = vmatpush.bf16.msra.mxu2 %v3125_v53  ;;  %1644 = vmatmul.bf16.vlgmr.msrb.gmra.mxu3 %v4137_v22  ;;  %v3877_v53 = vld [vmem:[#allocation2 + $0x554] sm:$0xf0]  ;;  %v3284_v38 = vld [vmem:[#allocation2 + $0x628] sm:$0xf] }
  0x92   :  { %1688 = vmatpush.bf16.msra.mxu3 %v3253_v57  ;;  %v2772_v57 = vld [vmem:[#allocation2 + $0x228] sm:$0xf]  ;;  %v3173_v60 = vor.u32 %v3877_v53, %v3172_v52  ;;  %v2582_v52 = vld [vmem:[#allocation2 + $0xb8] sm:$0xf0]  ;;  %v3759_v53 = vld [vmem:[#allocation2 + $0x1ac] sm:$0xf] }
  0x93   :  { %1650 = vmatpush.bf16.msra.mxu0 %v2853_v63  ;;  %v3841_v63 = vld [vmem:[#allocation2 + $0x434] sm:$0xf0]  ;;  %v2773_v2 = vor.u32 %v3777_v58, %v2772_v57  ;;  %v2585_v58 = vor.u32 %v3727_v50, %v2582_v52 }
  0x94   :  { %1663 = vmatpush.bf16.msra.mxu1 %v2981_v0  ;;  %v3156_v0 = vld [vmem:[#allocation2 + $0x528] sm:$0xf]  ;;  %v3029_v6 = vor.u32 %v3841_v63, %v3028_v62  ;;  %v3723_v62 = vld [vmem:[#allocation2 + $0x8c] sm:$0xf]  ;;  %v3901_v52 = vld [vmem:[#allocation2 + $0x614] sm:$0xf0] }
  0x95   :  { %1676 = vmatpush.bf16.msra.mxu2 %v3109_v1  ;;  %v3873_v1 = vld [vmem:[#allocation2 + $0x534] sm:$0xf0] }
  0x96   :  { %1689 = vmatpush.bf16.msra.mxu3 %v3237_v5  ;;  %v2901_v5 = vor.u32 %v3809_v61, %v2900_v59  ;;  %v3157_v10 = vor.u32 %v3873_v1, %v3156_v0  ;;  %v3917_v61 = vld [vmem:[#allocation2 + $0x694] sm:$0xf0]  ;;  %v2566_v0 = vld [vmem:[#allocation2 + $0x98] sm:$0xf0]  ;;  %v3755_v1 = vld [vmem:[#allocation2 + $0x18c] sm:$0xf] }
  0x97   :  { %1651 = vmatpush.bf16.msra.mxu0 %v2837_v11  ;;  %v3837_v11 = vld [vmem:[#allocation2 + $0x414] sm:$0xf0] }
  0x98   :  { %1664 = vmatpush.bf16.msra.mxu1 %v2965_v12  ;;  %v3140_v12 = vld [vmem:[#allocation2 + $0x508] sm:$0xf]  ;;  %v3013_v26 = vor.u32 %v3837_v11, %v3012_v9  ;;  %v3913_v9 = vld [vmem:[#allocation2 + $0x674] sm:$0xf0] }
  0x99   :  { %1677 = vmatpush.bf16.msra.mxu2 %v3093_v13  ;;  %v3869_v13 = vld [vmem:[#allocation2 + $0x514] sm:$0xf0] }
  0x9a   :  { %1690 = vmatpush.bf16.msra.mxu3 %v3221_v17  ;;  %v2757_v17 = vor.u32 %v3773_v4, %v2756_v3  ;;  %v3787_v3 = vld [vmem:[#allocation2 + $0x28c] sm:$0xf]  ;;  %v2822_v4 = vld [vmem:[#allocation2 + $0x298] sm:$0xf0] }
  0x9b   :  { %1652 = vmatpush.bf16.msra.mxu0 %v2821_v27  ;;  %v3799_v27 = vld [vmem:[#allocation2 + $0x2ec] sm:$0xf]  ;;  %v2825_v11 = vor.u32 %v3787_v3, %v2822_v4  ;;  %v3126_v4 = vld [vmem:[#allocation2 + $0x4f8] sm:$0xf0] }
  0x9c   :  { %1665 = vmatpush.bf16.msra.mxu1 %v2949_v28  ;;  %v2870_v28 = vld [vmem:[#allocation2 + $0x2f8] sm:$0xf0] }
  0x9d   :  { %1678 = vmatpush.bf16.msra.mxu2 %v3077_v29  ;;  %v3141_v29 = vor.u32 %v3869_v13, %v3140_v12  ;;  %v2873_v36 = vor.u32 %v3799_v27, %v2870_v28  ;;  %v2550_v12 = vld [vmem:[#allocation2 + $0x78] sm:$0xf0]  ;;  %v3751_v13 = vld [vmem:[#allocation2 + $0x16c] sm:$0xf]  ;;  %v2809_v27 = vor.u32 %v3783_v15, %v2806_v16 }
  0x9e   :  { %1691 = vmatpush.bf16.msra.mxu3 %v3205_v33  ;;  %v3364_v33 = vld [vmem:[#allocation2 + $0x6c8] sm:$0xf]  ;;  %v2681_v23 = vor.u32 %v3751_v13, %v2678_v14  ;;  %v2534_v28 = vld [vmem:[#allocation2 + $0x58] sm:$0xf0] }
  0x9f   :  { %1653 = vmatpush.bf16.msra.mxu0 %v2805_v42  ;;  %v2726_v42 = vld [vmem:[#allocation2 + $0x1d8] sm:$0xf0]  ;;  %v3365_v45 = vor.u32 %v3925_v34, %v3364_v33 }
  0xa0   :  { %1666 = vmatpush.bf16.msra.mxu1 %v2933_v43  ;;  %v3795_v43 = vld [vmem:[#allocation2 + $0x2cc] sm:$0xf]  ;;  %v2729_v47 = vor.u32 %v3763_v39, %v2726_v42  ;;  %v3905_v39 = vld [vmem:[#allocation2 + $0x634] sm:$0xf0] }
  0xa1   :  { %1679 = vmatpush.bf16.msra.mxu2 %v3061_v44  ;;  %v2854_v44 = vld [vmem:[#allocation2 + $0x2d8] sm:$0xf0]  ;;  %v3711_v42 = vld [vmem:[#allocation2 + $0x2c] sm:$0xf]  ;;  %v3285_v50 = vor.u32 %v3905_v39, %v3284_v38 }
  0xa2   :  { %1692 = vmatpush.bf16.msra.mxu3 %v3189_v48  ;;  %v3348_v48 = vld [vmem:[#allocation2 + $0x6a8] sm:$0xf]  ;;  %v2857_v51 = vor.u32 %v3795_v43, %v2854_v44  ;;  %v2966_v38 = vld [vmem:[#allocation2 + $0x3b8] sm:$0xf0]  ;;  %v3855_v39 = vld [vmem:[#allocation2 + $0x4ac] sm:$0xf] }
  0xa3   :  { %1654 = vmatpush.bf16.msra.mxu0 %v2789_v54  ;;  %v2710_v54 = vld [vmem:[#allocation2 + $0x1b8] sm:$0xf0]  ;;  %v3349_v57 = vor.u32 %v3921_v49, %v3348_v48  ;;  %v3775_v48 = vld [vmem:[#allocation2 + $0x22c] sm:$0xf] }
  0xa4   :  { %1667 = vmatpush.bf16.msra.mxu1 %v2917_v55  ;;  %v3791_v55 = vld [vmem:[#allocation2 + $0x2ac] sm:$0xf]  ;;  %v2713_v59 = vor.u32 %v3759_v53, %v2710_v54  ;;  %v2774_v49 = vld [vmem:[#allocation2 + $0x238] sm:$0xf0] }
  0xa5   :  { %1680 = vmatpush.bf16.msra.mxu2 %v3045_v56  ;;  %v2838_v56 = vld [vmem:[#allocation2 + $0x2b8] sm:$0xf0] }
  0xa6   :  { %1693 = vmatpush.bf16.msra.mxu3 %v3173_v60  ;;  %v3332_v60 = vld [vmem:[#allocation2 + $0x688] sm:$0xf]  ;;  %v2841_v63 = vor.u32 %v3791_v55, %v2838_v56  ;;  %v3707_v55 = vld [vmem:[#allocation2 + $0xc] sm:$0xf]  ;;  %v2502_v56 = vld [vmem:[#allocation2 + $0x18] sm:$0xf0] }
  0xa7   :  { %1655 = vmatpush.bf16.msra.mxu0 %v2773_v2  ;;  %v2694_v2 = vld [vmem:[#allocation2 + $0x198] sm:$0xf0] }
  0xa8   :  { %1668 = vmatpush.bf16.msra.mxu1 %v2901_v5  ;;  %v3333_v5 = vor.u32 %v3917_v61, %v3332_v60  ;;  %v2697_v7 = vor.u32 %v3755_v1, %v2694_v2  ;;  %v2630_v60 = vld [vmem:[#allocation2 + $0x118] sm:$0xf0]  ;;  %v3771_v61 = vld [vmem:[#allocation2 + $0x20c] sm:$0xf] }
  0xa9   :  { %1681 = vmatpush.bf16.msra.mxu2 %v3029_v6  ;;  %v2569_v6 = vor.u32 %v3723_v62, %v2566_v0  ;;  %v2758_v62 = vld [vmem:[#allocation2 + $0x218] sm:$0xf0]  ;;  %v3831_v0 = vld [vmem:[#allocation2 + $0x3ec] sm:$0xf] }
  0xaa   :  { %1694 = vmatpush.bf16.msra.mxu3 %v3157_v10  ;;  %v3719_v10 = vld [vmem:[#allocation2 + $0x6c] sm:$0xf]  ;;  %v2998_v1 = vld [vmem:[#allocation2 + $0x3f8] sm:$0xf0]  ;;  %v2761_v13 = vor.u32 %v3771_v61, %v2758_v62 }
  0xab   :  { %1656 = vmatpush.bf16.msra.mxu0 %v2757_v17  ;;  %v3317_v17 = vor.u32 %v3913_v9, %v3316_v8  ;;  %v2553_v21 = vor.u32 %v3719_v10, %v2550_v12  ;;  %v3863_v2 = vld [vmem:[#allocation2 + $0x4ec] sm:$0xf]  ;;  %v2505_v8 = vor.u32 %v3707_v55, %v2502_v56  ;;  %v3001_v14 = vor.u32 %v3831_v0, %v2998_v1  ;;  %v3078_v56 = vld [vmem:[#allocation2 + $0x498] sm:$0xf0] }
  0xac   :  { %1669 = vmatpush.bf16.msra.mxu1 %v2885_v25  ;;  %v3909_v25 = vld [vmem:[#allocation2 + $0x654] sm:$0xf0]  ;;  %v3927_v10 = vld [vmem:[#allocation2 + $0x6ec] sm:$0xf]  ;;  %v3129_v15 = vor.u32 %v3863_v2, %v3126_v4  ;;  %v2934_v2 = vld [vmem:[#allocation2 + $0x378] sm:$0xf0] }
  0xad   :  { %1682 = vmatpush.bf16.msra.mxu2 %v3013_v26  ;;  %v3715_v26 = vld [vmem:[#allocation2 + $0x4c] sm:$0xf]  ;;  %v3301_v33 = vor.u32 %v3909_v25, %v3300_v24  ;;  %v3110_v25 = vld [vmem:[#allocation2 + $0x4d8] sm:$0xf0] }
  0xae   :  { %1695 = vmatpush.bf16.msra.mxu3 %v3141_v29  ;;  %1657 = vmatmul.bf16.vlgmr.msra.gmra.mxu0 %v4131_v18  ;;  %v3747_v29 = vld [vmem:[#allocation2 + $0x14c] sm:$0xf]  ;;  %v2537_v35 = vor.u32 %v3715_v26, %v2534_v28 }
  0xaf   :  { %1701 = vmatpush.bf16.msrb.mxu0 %v3381_v30  ;;  %1670 = vmatmul.bf16.vlgmr.msra.gmra.mxu1 %v4135_v20  ;;  %v2662_v30 = vld [vmem:[#allocation2 + $0x158] sm:$0xf0]  ;;  %v3891_v26 = vld [vmem:[#allocation2 + $0x5cc] sm:$0xf] }
  0xb0   :  { %1714 = vmatpush.bf16.msrb.mxu1 %v2617_v31  ;;  %1683 = vmatmul.bf16.vlgmr.msra.gmra.mxu2 %v4151_v40  ;;  %v3779_v31 = vld [vmem:[#allocation2 + $0x24c] sm:$0xf] }
  0xb1   :  { %1727 = vmatpush.bf16.msrb.mxu2 %v2745_v32  ;;  %1696 = vmatmul.bf16.vlgmr.msra.gmra.mxu3 %v4153_v41  ;;  %v2790_v32 = vld [vmem:[#allocation2 + $0x258] sm:$0xf0]  ;;  %v3923_v28 = vld [vmem:[#allocation2 + $0x6cc] sm:$0xf] }
  0xb2   :  { %1740 = vmatpush.bf16.msrb.mxu3 %v2873_v36  ;;  %v2665_v36 = vor.u32 %v3747_v29, %v2662_v30  ;;  %v2793_v44 = vor.u32 %v3779_v31, %v2790_v32  ;;  %v3366_v29 = vld [vmem:[#allocation2 + $0x6d8] sm:$0xf0]  ;;  %v3815_v1 = vld [vmem:[#allocation2 + $0x36c] sm:$0xf] }
  0xb3   :  { %1702 = vmatpush.bf16.msrb.mxu0 %v3365_v45  ;;  %v2518_v45 = vld [vmem:[#allocation2 + $0x38] sm:$0xf0] }
  0xb4   :  { %1715 = vmatpush.bf16.msrb.mxu1 %v2601_v46  ;;  %v3743_v46 = vld [vmem:[#allocation2 + $0x12c] sm:$0xf]  ;;  %v2521_v53 = vor.u32 %v3711_v42, %v2518_v45  ;;  %v3369_v42 = vor.u32 %v3923_v28, %v3366_v29  ;;  %v4194_v28 = vld [vmem:[%s4287_s2] sm:$0xf] }
  0xb5   :  { %1728 = vmatpush.bf16.msrb.mxu2 %v2729_v47  ;;  %v2646_v47 = vld [vmem:[#allocation2 + $0x138] sm:$0xf0]  ;;  %v3887_v45 = vld [vmem:[#allocation2 + $0x5ac] sm:$0xf] }
  0xb6   :  { %1741 = vmatpush.bf16.msrb.mxu3 %v2857_v51  ;;  %v3268_v51 = vld [vmem:[#allocation2 + $0x608] sm:$0xf]  ;;  %v2649_v54 = vor.u32 %v3743_v46, %v2646_v47  ;;  %v3222_v46 = vld [vmem:[#allocation2 + $0x5b8] sm:$0xf0]  ;;  %v3919_v47 = vld [vmem:[#allocation2 + $0x6ac] sm:$0xf] }
  0xb7   :  { %1703 = vmatpush.bf16.msrb.mxu0 %v3349_v57  ;;  %v4171_v34 = vpop.f32.mrf.mxu0  ;;  %v3739_v57 = vld [vmem:[#allocation2 + $0x10c] sm:$0xf]  ;;  %v3269_v3 = vor.u32 %v3901_v52, %v3268_v51  ;;  %v3225_v51 = vor.u32 %v3887_v45, %v3222_v46  ;;  %v3158_v45 = vld [vmem:[#allocation2 + $0x538] sm:$0xf0] }
  0xb8   :  { %1716 = vmatpush.bf16.msrb.mxu1 %v2585_v58  ;;  %v4173_v43 = vpop.f32.mrf.mxu1  ;;  %v4175_v58 = vpop.f32.mrf.mxu2  ;;  %v2633_v9 = vor.u32 %v3739_v57, %v2630_v60  ;;  %v3819_v52 = vld [vmem:[#allocation2 + $0x38c] sm:$0xf]  ;;  %v3334_v60 = vld [vmem:[#allocation2 + $0x698] sm:$0xf0] }
  0xb9   :  { %1729 = vmatpush.bf16.msrb.mxu2 %v2713_v59  ;;  %v2777_v59 = vor.u32 %v3775_v48, %v2774_v49  ;;  %v3350_v48 = vld [vmem:[#allocation2 + $0x6b8] sm:$0xf0]  ;;  %v3883_v57 = vld [vmem:[#allocation2 + $0x58c] sm:$0xf] }
  0xba   :  { %1742 = vmatpush.bf16.msrb.mxu3 %v2841_v63  ;;  %v4177_v63 = vpop.f32.mrf.mxu3  ;;  %v3353_v55 = vor.u32 %v3919_v47, %v3350_v48  ;;  %v3903_v46 = vld [vmem:[#allocation2 + $0x62c] sm:$0xf]  ;;  %v3286_v47 = vld [vmem:[#allocation2 + $0x638] sm:$0xf0]  ;;  %v288_v48 = vperm.slane %v4194_v28, 0 }
  0xbb   :  { %1704 = vmatpush.bf16.msrb.mxu0 %v3333_v5  ;;  %v3895_v5 = vld [vmem:[#allocation2 + $0x5ec] sm:$0xf] }
  0xbc   :  { %1717 = vmatpush.bf16.msrb.mxu1 %v2569_v6  ;;  %v3254_v6 = vld [vmem:[#allocation2 + $0x5f8] sm:$0xf0] }
  0xbd   :  { %1730 = vmatpush.bf16.msrb.mxu2 %v2697_v7  ;;  %v3257_v16 = vor.u32 %v3895_v5, %v3254_v6  ;;  %v3062_v5 = vld [vmem:[#allocation2 + $0x478] sm:$0xf0]  ;;  %v3879_v6 = vld [vmem:[#allocation2 + $0x56c] sm:$0xf] }
  0xbe   :  { %1743 = vmatpush.bf16.msrb.mxu3 %v2825_v11  ;;  %v3382_v11 = vld [vmem:[#allocation2 + $0x6f8] sm:$0xf0] }
  0xbf   :  { %1705 = vmatpush.bf16.msrb.mxu0 %v3317_v17  ;;  %v1452_v7 = vpop.f32.mrf.mxu0  ;;  %v3827_v17 = vld [vmem:[#allocation2 + $0x3cc] sm:$0xf]  ;;  %v3385_v24 = vor.u32 %v3927_v10, %v3382_v11  ;;  %v2937_v10 = vor.u32 %v3815_v1, %v2934_v2 }
  0xc0   :  { %1718 = vmatpush.bf16.msrb.mxu1 %v2553_v21  ;;  %v1465_v12 = vpop.f32.mrf.mxu1  ;;  %v2982_v21 = vld [vmem:[#allocation2 + $0x3d8] sm:$0xf0]  ;;  %v1478_v30 = vpop.f32.mrf.mxu2 }
  0xc1   :  { %1731 = vmatpush.bf16.msrb.mxu2 %v2681_v23  ;;  %v3859_v23 = vld [vmem:[#allocation2 + $0x4cc] sm:$0xf]  ;;  %v2985_v31 = vor.u32 %v3827_v17, %v2982_v21  ;;  %v3190_v7 = vld [vmem:[#allocation2 + $0x578] sm:$0xf0] }
  0xc2   :  { %1744 = vmatpush.bf16.msrb.mxu3 %v2809_v27  ;;  %v3238_v27 = vld [vmem:[#allocation2 + $0x5d8] sm:$0xf0]  ;;  %v1491_v32 = vpop.f32.mrf.mxu3  ;;  %v3193_v12 = vor.u32 %v3879_v6, %v3190_v7 }
  0xc3   :  { %1706 = vmatpush.bf16.msrb.mxu0 %v3301_v33  ;;  %v3113_v33 = vor.u32 %v3859_v23, %v3110_v25  ;;  %v3046_v21 = vld [vmem:[#allocation2 + $0x458] sm:$0xf0]  ;;  %v3875_v23 = vld [vmem:[#allocation2 + $0x54c] sm:$0xf] }
  0xc4   :  { %1719 = vmatpush.bf16.msrb.mxu1 %v2537_v35  ;;  %v3241_v35 = vor.u32 %v3891_v26, %v3238_v27  ;;  %v3907_v25 = vld [vmem:[#allocation2 + $0x64c] sm:$0xf]  ;;  %v3302_v26 = vld [vmem:[#allocation2 + $0x658] sm:$0xf0] }
  0xc5   :  { %1732 = vmatpush.bf16.msrb.mxu2 %v2665_v36  ;;  %v3823_v36 = vld [vmem:[#allocation2 + $0x3ac] sm:$0xf] }
  0xc6   :  { %1745 = vmatpush.bf16.msrb.mxu3 %v2793_v44  ;;  %v3094_v44 = vld [vmem:[#allocation2 + $0x4b8] sm:$0xf0]  ;;  %v2969_v49 = vor.u32 %v3823_v36, %v2966_v38  ;;  %v3839_v38 = vld [vmem:[#allocation2 + $0x42c] sm:$0xf] }
  0xc7   :  { %1707 = vmatpush.bf16.msrb.mxu0 %v3285_v50  ;;  %v3097_v50 = vor.u32 %v3855_v39, %v3094_v44  ;;  %v2902_v36 = vld [vmem:[#allocation2 + $0x338] sm:$0xf0]  ;;  %v3305_v39 = vor.u32 %v3907_v25, %v3302_v26  ;;  %v3871_v44 = vld [vmem:[#allocation2 + $0x52c] sm:$0xf]  ;;  %v3957_v25 = vld [vmem:[#allocation4 + $0xd4] sm:$0xf0] }
  0xc8   :  { %1720 = vmatpush.bf16.msrb.mxu1 %v2521_v53  ;;  %v2950_v53 = vld [vmem:[#allocation2 + $0x398] sm:$0xf0] }
  0xc9   :  { %1733 = vmatpush.bf16.msrb.mxu2 %v2649_v54  ;;  %v3851_v54 = vld [vmem:[#allocation2 + $0x48c] sm:$0xf] }
  0xca   :  { %1746 = vmatpush.bf16.msrb.mxu3 %v2777_v59  ;;  %v3915_v59 = vld [vmem:[#allocation2 + $0x68c] sm:$0xf] }
  0xcb   :  { %1708 = vmatpush.bf16.msrb.mxu0 %v3269_v3  ;;  %v4183_v61 = vpop.f32.mrf.mxu0  ;;  %v3847_v3 = vld [vmem:[#allocation2 + $0x46c] sm:$0xf]  ;;  %v3337_v4 = vor.u32 %v3915_v59, %v3334_v60  ;;  %v3142_v59 = vld [vmem:[#allocation2 + $0x518] sm:$0xf0] }
  0xcc   :  { %1721 = vmatpush.bf16.msrb.mxu1 %v2505_v8  ;;  %v4185_v62 = vpop.f32.mrf.mxu1  ;;  %v3911_v8 = vld [vmem:[#allocation2 + $0x66c] sm:$0xf]  ;;  %v3065_v11 = vor.u32 %v3847_v3, %v3062_v5  ;;  %v3508_v3 = vld [vmem:[#allocation4 + $0xf0] sm:$0xf] }
  0xcd   :  { %1734 = vmatpush.bf16.msrb.mxu2 %v2633_v9  ;;  %v3318_v9 = vld [vmem:[#allocation2 + $0x678] sm:$0xf0]  ;;  %v3899_v60 = vld [vmem:[#allocation2 + $0x60c] sm:$0xf] }
  0xce   :  { %1747 = vmatpush.bf16.msrb.mxu3 %v2761_v13  ;;  %1709 = vmatmul.bf16.vlgmr.msrb.gmra.mxu0 %v4149_v37  ;;  %v3811_v13 = vld [vmem:[#allocation2 + $0x34c] sm:$0xf]  ;;  %v3321_v17 = vor.u32 %v3911_v8, %v3318_v9  ;;  %v1451_v9 = vadd.f32 %v4171_v34, %v288_v48  ;;  %v3492_v34 = vld [vmem:[#allocation4 + $0xd0] sm:$0xf] }
  0xcf   :  { %1753 = vmatpush.bf16.msra.mxu0 %v3001_v14  ;;  %1722 = vmatmul.bf16.vlgmr.msrb.gmra.mxu1 %v4133_v19  ;;  %v3081_v19 = vor.u32 %v3851_v54, %v3078_v56  ;;  %v2918_v14 = vld [vmem:[#allocation2 + $0x358] sm:$0xf0]  ;;  %v3835_v54 = vld [vmem:[#allocation2 + $0x40c] sm:$0xf] }
  0xd0   :  { %1766 = vmatpush.bf16.msra.mxu1 %v3129_v15  ;;  %1735 = vmatmul.bf16.vlgmr.msrb.gmra.mxu2 %v4137_v22  ;;  %v3206_v22 = vld [vmem:[#allocation2 + $0x598] sm:$0xf0]  ;;  %v3843_v15 = vld [vmem:[#allocation2 + $0x44c] sm:$0xf]  ;;  %v2921_v29 = vor.u32 %v3811_v13, %v2918_v14  ;;  %v3500_v13 = vld [vmem:[#allocation4 + $0xe0] sm:$0xf] }
  0xd1   :  { %1779 = vmatpush.bf16.msra.mxu2 %v3257_v16  ;;  %1748 = vmatmul.bf16.vlgmr.msrb.gmra.mxu3 %v4131_v18  ;;  %v2953_v18 = vor.u32 %v3819_v52, %v2950_v53  ;;  %v3209_v0 = vor.u32 %v3883_v57, %v3206_v22  ;;  %v3049_v32 = vor.u32 %v3843_v15, %v3046_v21  ;;  %v2886_v53 = vld [vmem:[#allocation2 + $0x318] sm:$0xf0]  ;;  %v3867_v22 = vld [vmem:[#allocation2 + $0x50c] sm:$0xf]  ;;  %v3959_v14 = vld [vmem:[#allocation4 + $0xe4] sm:$0xf0] }
  0xd2   :  { %1792 = vmatpush.bf16.msra.mxu3 %v3385_v24  ;;  %v3174_v24 = vld [vmem:[#allocation2 + $0x558] sm:$0xf0]  ;;  %v3161_v52 = vor.u32 %v3871_v44, %v3158_v45  ;;  %v3289_v57 = vor.u32 %v3903_v46, %v3286_v47  ;;  %v3145_v6 = vor.u32 %v3867_v22, %v3142_v59  ;;  %v3428_v21 = vld [vmem:[#allocation4 + $0x50] sm:$0xf]  ;;  %v3404_v45 = vld [vmem:[#allocation4 + $0x20] sm:$0xf] }
  0xd3   :  { %1754 = vmatpush.bf16.msra.mxu0 %v2985_v31  ;;  %v4187_v16 = vpop.f32.mrf.mxu2  ;;  %v1504_v30 = vpop.f32.mrf.mxu0  ;;  %v3935_v46 = vld [vmem:[#allocation4 + $0x24] sm:$0xf0]  ;;  %v3460_v22 = vld [vmem:[#allocation4 + $0x90] sm:$0xf]  ;;  %v3949_v59 = vld [vmem:[#allocation4 + $0x94] sm:$0xf0] }
  0xd4   :  { %1767 = vmatpush.bf16.msra.mxu1 %v3113_v33  ;;  %v4189_v27 = vpop.f32.mrf.mxu3  ;;  %v1517_v31 = vpop.f32.mrf.mxu1  ;;  %v3177_v33 = vor.u32 %v3875_v23, %v3174_v24  ;;  %v3941_v23 = vld [vmem:[#allocation4 + $0x54] sm:$0xf0]  ;;  %v3501_v24 = vor.u32 %v3959_v14, %v3500_v13  ;;  %v3939_v30 = vld [vmem:[#allocation4 + $0x44] sm:$0xf0]  ;;  %v3438_v14 = vld [vmem:[#allocation4 + $0x68] sm:$0xf0] }
  0xd5   :  { %1780 = vmatpush.bf16.msra.mxu2 %v3241_v35  ;;  %v3807_v35 = vld [vmem:[#allocation2 + $0x32c] sm:$0xf]  ;;  %v3429_v26 = vor.u32 %v3941_v23, %v3428_v21  ;;  %v3484_v31 = vld [vmem:[#allocation4 + $0xc0] sm:$0xf]  ;;  %v3572_v23 = vld [vmem:[#allocation4 + $0x170] sm:$0xf] }
  0xd6   :  { %1793 = vmatpush.bf16.msra.mxu3 %v3369_v42  ;;  %v3030_v42 = vld [vmem:[#allocation2 + $0x438] sm:$0xf0]  ;;  %v3502_v21 = vld [vmem:[#allocation4 + $0xe8] sm:$0xf0] }
  0xd7   :  { %1755 = vmatpush.bf16.msra.mxu0 %v2969_v49  ;;  %v2905_v49 = vor.u32 %v3807_v35, %v2902_v36  ;;  %v3937_v36 = vld [vmem:[#allocation4 + $0x34] sm:$0xf0] }
  0xd8   :  { %1768 = vmatpush.bf16.msra.mxu1 %v3097_v50  ;;  %v3803_v50 = vld [vmem:[#allocation2 + $0x30c] sm:$0xf] }
  0xd9   :  { %1781 = vmatpush.bf16.msra.mxu2 %v3225_v51  ;;  %v3033_v51 = vor.u32 %v3839_v38, %v3030_v42  ;;  %v2889_v2 = vor.u32 %v3803_v50, %v2886_v53  ;;  %v3953_v42 = vld [vmem:[#allocation4 + $0xb4] sm:$0xf0]  ;;  %v3951_v50 = vld [vmem:[#allocation4 + $0xa4] sm:$0xf0] }
  0xda   :  { %1794 = vmatpush.bf16.msra.mxu3 %v3353_v55  ;;  %v3014_v55 = vld [vmem:[#allocation2 + $0x418] sm:$0xf0] }
  0xdb   :  { %1756 = vmatpush.bf16.msra.mxu0 %v2953_v18  ;;  %v1530_v56 = vpop.f32.mrf.mxu2  ;;  %v3270_v18 = vld [vmem:[#allocation2 + $0x618] sm:$0xf0]  ;;  %v3017_v5 = vor.u32 %v3835_v54, %v3014_v55  ;;  %v3396_v55 = vld [vmem:[#allocation4 + $0x10] sm:$0xf] }
  0xdc   :  { %1769 = vmatpush.bf16.msra.mxu1 %v3081_v19  ;;  %v3444_v19 = vld [vmem:[#allocation4 + $0x70] sm:$0xf]  ;;  %v1543_v1 = vpop.f32.mrf.mxu3  ;;  %v3273_v7 = vor.u32 %v3899_v60, %v3270_v18 }
  0xdd   :  { %1782 = vmatpush.bf16.msra.mxu2 %v3209_v0  ;;  %v3945_v0 = vld [vmem:[#allocation4 + $0x74] sm:$0xf0]  ;;  %v3931_v1 = vld [vmem:[#allocation4 + $0x4] sm:$0xf0] }
  0xde   :  { %1795 = vmatpush.bf16.msra.mxu3 %v3337_v4  ;;  %v3961_v4 = vld [vmem:[#allocation4 + $0xf4] sm:$0xf0]  ;;  %v3445_v8 = vor.u32 %v3945_v0, %v3444_v19  ;;  %v3388_v0 = vld [vmem:[#allocation4] sm:$0xf] }
  0xdf   :  { %1757 = vmatpush.bf16.msra.mxu0 %v2937_v10  ;;  %v3436_v10 = vld [vmem:[#allocation4 + $0x60] sm:$0xf] }
  0xe0   :  { %1770 = vmatpush.bf16.msra.mxu1 %v3065_v11  ;;  %v3943_v11 = vld [vmem:[#allocation4 + $0x64] sm:$0xf0] }
  0xe1   :  { %1783 = vmatpush.bf16.msra.mxu2 %v3193_v12  ;;  %v3509_v12 = vor.u32 %v3961_v4, %v3508_v3  ;;  %v3437_v15 = vor.u32 %v3943_v11, %v3436_v10  ;;  %v3944_v3 = vld [vmem:[#allocation4 + $0x74] sm:$0xf]  ;;  %v3389_v11 = vor.u32 %v3931_v1, %v3388_v0  ;;  %v3406_v1 = vld [vmem:[#allocation4 + $0x28] sm:$0xf0] }
  0xe2   :  { %1796 = vmatpush.bf16.msra.mxu3 %v3321_v17  ;;  %v1464_v17 = vadd.f32 %v4173_v43, %v1451_v9  ;;  %v3420_v43 = vld [vmem:[#allocation4 + $0x40] sm:$0xf]  ;;  %v3510_v9 = vld [vmem:[#allocation4 + $0xf8] sm:$0xf0] }
  0xe3   :  { %1758 = vmatpush.bf16.msra.mxu0 %v2921_v29 }
  0xe4   :  { %1771 = vmatpush.bf16.msra.mxu1 %v3049_v32  ;;  %v1477_v29 = vadd.f32 %v4175_v58, %v1464_v17  ;;  %v3955_v32 = vld [vmem:[#allocation4 + $0xc4] sm:$0xf0]  ;;  %v3958_v17 = vld [vmem:[#allocation4 + $0xe4] sm:$0xf] }
  0xe5   :  { %1784 = vmatpush.bf16.msra.mxu2 %v3177_v33  ;;  %v3421_v33 = vor.u32 %v3939_v30, %v3420_v43  ;;  %v3485_v38 = vor.u32 %v3955_v32, %v3484_v31  ;;  %v3564_v43 = vld [vmem:[#allocation4 + $0x160] sm:$0xf]  ;;  %v3975_v30 = vld [vmem:[#allocation4 + $0x164] sm:$0xf0]  ;;  %v3430_v31 = vld [vmem:[#allocation4 + $0x58] sm:$0xf0]  ;;  %v3505_v32 = vor.u32 %v3958_v17, %v3502_v21 }
  0xe6   :  { %1797 = vmatpush.bf16.msra.mxu3 %v3305_v39  ;;  %v3476_v39 = vld [vmem:[#allocation4 + $0xb0] sm:$0xf]  ;;  %v3965_v17 = vld [vmem:[#allocation4 + $0x114] sm:$0xf0]  ;;  %v3948_v21 = vld [vmem:[#allocation4 + $0x94] sm:$0xf] }
  0xe7   :  { %1759 = vmatpush.bf16.msra.mxu0 %v2905_v49  ;;  %v3477_v47 = vor.u32 %v3953_v42, %v3476_v39  ;;  %v3938_v39 = vld [vmem:[#allocation4 + $0x44] sm:$0xf]  ;;  %v3422_v42 = vld [vmem:[#allocation4 + $0x48] sm:$0xf0] }
  0xe8   :  { %1772 = vmatpush.bf16.msra.mxu1 %v3033_v51  ;;  %v289_v51 = vperm.slane %v4194_v28, 1 }
  0xe9   :  { %1785 = vmatpush.bf16.msra.mxu2 %v3161_v52  ;;  %v3405_v52 = vor.u32 %v3935_v46, %v3404_v45  ;;  %v3486_v46 = vld [vmem:[#allocation4 + $0xc8] sm:$0xf0] }
  0xea   :  { %1798 = vmatpush.bf16.msra.mxu3 %v3289_v57  ;;  %v1542_v60 = vadd.f32 %v4189_v27, %v289_v51 }
  0xeb   :  { %1760 = vmatpush.bf16.msra.mxu0 %v2889_v2  ;;  %v1554_v35 = vpop.f32.mrf.mxu0  ;;  %v3461_v2 = vor.u32 %v3949_v59, %v3460_v22  ;;  %v3969_v22 = vld [vmem:[#allocation4 + $0x134] sm:$0xf0] }
  0xec   :  { %1773 = vmatpush.bf16.msra.mxu1 %v3017_v5  ;;  %v3452_v5 = vld [vmem:[#allocation4 + $0x80] sm:$0xf]  ;;  %v1555_v10 = vadd.f32 %v1554_v35, %v1542_v60  ;;  %v3565_v35 = vor.u32 %v3975_v30, %v3564_v43  ;;  %v3952_v60 = vld [vmem:[#allocation4 + $0xb4] sm:$0xf]  ;;  %v3946_v30 = vld [vmem:[#allocation4 + $0x84] sm:$0xf] }
  0xed   :  { %1786 = vmatpush.bf16.msra.mxu2 %v3145_v6  ;;  %v3947_v6 = vld [vmem:[#allocation4 + $0x84] sm:$0xf0] }
  0xee   :  { %1799 = vmatpush.bf16.msra.mxu3 %v3273_v7  ;;  %1761 = vmatmul.bf16.vlgmr.msra.gmra.mxu0 %v4135_v20  ;;  %v3493_v20 = vor.u32 %v3957_v25, %v3492_v34  ;;  %v3453_v13 = vor.u32 %v3947_v6, %v3452_v5  ;;  %v3950_v6 = vld [vmem:[#allocation4 + $0xa4] sm:$0xf] }
  0xef   :  { %2203 = vmatpush.bf16.msrb.mxu0 %v3445_v8  ;;  %1774 = vmatmul.bf16.vlgmr.msra.gmra.mxu1 %v4151_v40  ;;  %v1490_v40 = vadd.f32 %v4177_v63, %v1477_v29  ;;  %v3468_v63 = vld [vmem:[#allocation4 + $0xa0] sm:$0xf]  ;;  %v3960_v8 = vld [vmem:[#allocation4 + $0xf4] sm:$0xf] }
  0xf0   :  { %2216 = vmatpush.bf16.msrb.mxu1 %v3509_v12  ;;  %1787 = vmatmul.bf16.vlgmr.msra.gmra.mxu2 %v4153_v41  ;;  %v3412_v41 = vld [vmem:[#allocation4 + $0x30] sm:$0xf]  ;;  %v3469_v56 = vor.u32 %v3951_v50, %v3468_v63  ;;  %v3971_v63 = vld [vmem:[#allocation4 + $0x144] sm:$0xf0] }
  0xf1   :  { %1800 = vmatmul.bf16.vlgmr.msra.gmra.mxu3 %v4149_v37  ;;  %v1567_v37 = vpop.f32.mrf.mxu1  ;;  %v3413_v58 = vor.u32 %v3937_v36, %v3412_v41  ;;  %v1503_v44 = vadd.f32 %v4183_v61, %v1490_v40  ;;  %v3933_v61 = vld [vmem:[#allocation4 + $0x14] sm:$0xf0]  ;;  %v3494_v40 = vld [vmem:[#allocation4 + $0xd8] sm:$0xf0]  ;;  %v3556_v41 = vld [vmem:[#allocation4 + $0x150] sm:$0xf] }
  0xf2   :  { %v3397_v18 = vor.u32 %v3933_v61, %v3396_v55  ;;  %v1568_v34 = vadd.f32 %v1567_v37, %v1555_v10  ;;  %v3973_v36 = vld [vmem:[#allocation4 + $0x154] sm:$0xf0]  ;;  %v3414_v55 = vld [vmem:[#allocation4 + $0x38] sm:$0xf0] }
  0xf3   :  { %2204 = vmatpush.bf16.msrb.mxu0 %v3437_v15  ;;  %v4206_v48 = vpop.f32.mrf.mxu2  ;;  %v1556_v53 = vpop.f32.mrf.mxu0  ;;  %v1516_v54 = vadd.f32 %v4185_v62, %v1503_v44  ;;  %v3446_v62 = vld [vmem:[#allocation4 + $0x78] sm:$0xf0]  ;;  %v3513_v15 = vor.u32 %v3960_v8, %v3510_v9  ;;  %v3954_v44 = vld [vmem:[#allocation4 + $0xc4] sm:$0xf]  ;;  %v3557_v45 = vor.u32 %v3973_v36, %v3556_v41 }
  0xf4   :  { %2217 = vmatpush.bf16.msrb.mxu1 %v3501_v24  ;;  %v4208_v49 = vpop.f32.mrf.mxu3  ;;  %v3449_v12 = vor.u32 %v3944_v3, %v3446_v62  ;;  %v3977_v24 = vld [vmem:[#allocation4 + $0x174] sm:$0xf0]  ;;  %v3489_v61 = vor.u32 %v3954_v44, %v3486_v46  ;;  %v3967_v62 = vld [vmem:[#allocation4 + $0x124] sm:$0xf0] }
  0xf5   :  { %v1529_v19 = vadd.f32 %v4187_v16, %v1516_v54  ;;  %v3942_v16 = vld [vmem:[#allocation4 + $0x64] sm:$0xf]  ;;  %v3573_v25 = vor.u32 %v3977_v24, %v3572_v23  ;;  %v3462_v23 = vld [vmem:[#allocation4 + $0x98] sm:$0xf0]  ;;  %v3993_v46 = vld [vmem:[#allocation4 + $0x1f4] sm:$0xf0] }
  0xf6   :  { %v3441_v29 = vor.u32 %v3942_v16, %v3438_v14  ;;  %v3465_v43 = vor.u32 %v3948_v21, %v3462_v23  ;;  %v3596_v21 = vld [vmem:[#allocation4 + $0x1a0] sm:$0xf]  ;;  %v3983_v23 = vld [vmem:[#allocation4 + $0x1a4] sm:$0xf0] }
  0xf7   :  { %2205 = vmatpush.bf16.msrb.mxu0 %v3429_v26  ;;  %v1805_v27 = vmax.f32 %v1529_v19, 0.0  ;;  %2229 = vmatpush.bf16.msrb.mxu2 %v3573_v25  ;;  %v3390_v25 = vld [vmem:[#allocation4 + $0x8] sm:$0xf0] }
  0xf8   :  { %2218 = vmatpush.bf16.msrb.mxu1 %v3493_v20  ;;  %v3940_v20 = vld [vmem:[#allocation4 + $0x54] sm:$0xf] }
  0xf9   :  { %v1569_v57 = vpop.f32.mrf.mxu1  ;;  %v4214_v26 = vpack.c.bf16 %v1805_v27, %v1805_v27  ;;  %v3433_v37 = vor.u32 %v3940_v20, %v3430_v31  ;;  %v3932_v27 = vld [vmem:[#allocation4 + $0x14] sm:$0xf]  ;;  %v3516_v20 = vld [vmem:[#allocation4 + $0x100] sm:$0xf]  ;;  %v3963_v31 = vld [vmem:[#allocation4 + $0x104] sm:$0xf0] }
  0xfa   :  { %v3540_v57 = vld [vmem:[#allocation4 + $0x130] sm:$0xf] }
  0xfb   :  { %2206 = vmatpush.bf16.msrb.mxu0 %v3421_v33  ;;  %v1582_v4 = vpop.f32.mrf.mxu2  ;;  %v3956_v33 = vld [vmem:[#allocation4 + $0xd4] sm:$0xf]  ;;  %2230 = vmatpush.bf16.msrb.mxu2 %v3565_v35 }
  0xfc   :  { %2219 = vmatpush.bf16.msrb.mxu1 %v3485_v38  ;;  %v1595_v7 = vpop.f32.mrf.mxu3  ;;  %v1581_v38 = vadd.f32 %v4206_v48, %v1568_v34  ;;  %v3936_v48 = vld [vmem:[#allocation4 + $0x34] sm:$0xf]  ;;  %v3532_v4 = vld [vmem:[#allocation4 + $0x120] sm:$0xf]  ;;  %v3930_v34 = vld [vmem:[#allocation4 + $0x4] sm:$0xf] }
  0xfd   :  { %v3417_v19 = vor.u32 %v3936_v48, %v3414_v55  ;;  %v3470_v7 = vld [vmem:[#allocation4 + $0xa8] sm:$0xf0]  ;;  %v3533_v16 = vor.u32 %v3967_v62, %v3532_v4  ;;  %v3976_v35 = vld [vmem:[#allocation4 + $0x174] sm:$0xf]  ;;  %v3393_v41 = vor.u32 %v3930_v34, %v3390_v25  ;;  %v3970_v48 = vld [vmem:[#allocation4 + $0x144] sm:$0xf] }
  0xfe   :  { %v1594_v50 = vadd.f32 %v4208_v49, %v1581_v38  ;;  %v3934_v49 = vld [vmem:[#allocation4 + $0x24] sm:$0xf]  ;;  %v3473_v14 = vor.u32 %v3950_v6, %v3470_v7  ;;  %v3517_v38 = vor.u32 %v3963_v31, %v3516_v20  ;;  %v3534_v62 = vld [vmem:[#allocation4 + $0x128] sm:$0xf0]  ;;  %v3588_v31 = vld [vmem:[#allocation4 + $0x190] sm:$0xf] }
  0xff   :  { %2207 = vmatpush.bf16.msrb.mxu0 %v3413_v58  ;;  %v3497_v58 = vor.u32 %v3956_v33, %v3494_v40  ;;  %2231 = vmatpush.bf16.msrb.mxu2 %v3557_v45  ;;  %v3409_v9 = vor.u32 %v3934_v49, %v3406_v1  ;;  %v3574_v40 = vld [vmem:[#allocation4 + $0x178] sm:$0xf0]  ;;  %v3636_v45 = vld [vmem:[#allocation4 + $0x1f0] sm:$0xf]  ;;  %v3612_v49 = vld [vmem:[#allocation4 + $0x1c0] sm:$0xf] }
 0x100   :  { %2220 = vmatpush.bf16.msrb.mxu1 %v3477_v47  ;;  %v3548_v47 = vld [vmem:[#allocation4 + $0x140] sm:$0xf]  ;;  %v3966_v4 = vld [vmem:[#allocation4 + $0x124] sm:$0xf]  ;;  %v3518_v25 = vld [vmem:[#allocation4 + $0x108] sm:$0xf0] }
 0x101   :  { %v3962_v34 = vld [vmem:[#allocation4 + $0x104] sm:$0xf] }
 0x103   :  { %2208 = vmatpush.bf16.msrb.mxu0 %v3405_v52  ;;  %v3425_v52 = vor.u32 %v3938_v39, %v3422_v42  ;;  %v3577_v39 = vor.u32 %v3976_v35, %v3574_v40  ;;  %v3974_v42 = vld [vmem:[#allocation4 + $0x164] sm:$0xf]  ;;  %v3979_v35 = vld [vmem:[#allocation4 + $0x184] sm:$0xf0] }
 0x104   :  { %2221 = vmatpush.bf16.msrb.mxu1 %v3469_v56  ;;  %v3549_v56 = vor.u32 %v3971_v63, %v3548_v47  ;;  %v3972_v47 = vld [vmem:[#allocation4 + $0x154] sm:$0xf]  ;;  %v3637_v63 = vor.u32 %v3993_v46, %v3636_v45 }
 0x106   :  { %2232 = vmatpush.bf16.msrb.mxu2 %v3549_v56  ;;  %2242 = vmatpush.bf16.msrb.mxu3 %v3637_v63  ;;  %v3550_v56 = vld [vmem:[#allocation4 + $0x148] sm:$0xf0] }
 0x107   :  { %2209 = vmatpush.bf16.msrb.mxu0 %v3397_v18  ;;  %v3478_v18 = vld [vmem:[#allocation4 + $0xb8] sm:$0xf0] }
 0x108   :  { %2222 = vmatpush.bf16.msrb.mxu1 %v3461_v2  ;;  %v3541_v2 = vor.u32 %v3969_v22, %v3540_v57  ;;  %v3481_v3 = vor.u32 %v3952_v60, %v3478_v18  ;;  %v3553_v57 = vor.u32 %v3970_v48, %v3550_v56  ;;  %v3620_v22 = vld [vmem:[#allocation4 + $0x1d0] sm:$0xf]  ;;  %v3968_v60 = vld [vmem:[#allocation4 + $0x134] sm:$0xf]  ;;  %v3614_v56 = vld [vmem:[#allocation4 + $0x1c8] sm:$0xf0] }
 0x10a   :  { %2233 = vmatpush.bf16.msrb.mxu2 %v3541_v2 }
 0x10b   :  { %2210 = vmatpush.bf16.msrb.mxu0 %v3389_v11  ;;  %v1606_v51 = vpop.f32.mrf.mxu0 }
 0x10c   :  { %2223 = vmatpush.bf16.msrb.mxu1 %v3453_v13  ;;  %v1607_v53 = vadd.f32 %v1606_v51, %v1594_v50  ;;  %v1619_v54 = vpop.f32.mrf.mxu1  ;;  %v3558_v50 = vld [vmem:[#allocation4 + $0x158] sm:$0xf0] }
 0x10d   :  { %v3561_v51 = vor.u32 %v3972_v47, %v3558_v50  ;;  %v3988_v50 = vld [vmem:[#allocation4 + $0x1d4] sm:$0xf] }
 0x10e   :  { %2211 = vmatmul.bf16.vlgmr.msrb.gmra.mxu0 %v4214_v26  ;;  %v1620_v59 = vadd.f32 %v1619_v54, %v1607_v53  ;;  %2234 = vmatpush.bf16.msrb.mxu2 %v3533_v16  ;;  %v3628_v53 = vld [vmem:[#allocation4 + $0x1e0] sm:$0xf]  ;;  %v3991_v54 = vld [vmem:[#allocation4 + $0x1e4] sm:$0xf0]  ;;  %v3526_v16 = vld [vmem:[#allocation4 + $0x118] sm:$0xf0] }
 0x10f   :  { %2255 = vmatpush.bf16.msra.mxu0 %v3449_v12  ;;  %v3398_v12 = vld [vmem:[#allocation4 + $0x18] sm:$0xf0] }
 0x110   :  { %2268 = vmatpush.bf16.msra.mxu1 %v3513_v15  ;;  %v1806_v0 = vmax.f32 %v1620_v59, 0.0  ;;  %v3524_v15 = vld [vmem:[#allocation4 + $0x110] sm:$0xf]  ;;  %v3401_v24 = vor.u32 %v3932_v27, %v3398_v12  ;;  %v3989_v59 = vld [vmem:[#allocation4 + $0x1d4] sm:$0xf0] }
 0x111   :  { %v3985_v27 = vld [vmem:[#allocation4 + $0x1b4] sm:$0xf0] }
 0x112   :  { %v1810_v5 = vpack.c.bf16 %v1806_v0, %v1806_v0  ;;  %v3542_v0 = vld [vmem:[#allocation4 + $0x138] sm:$0xf0] }
 0x113   :  { %2256 = vmatpush.bf16.msra.mxu0 %v3441_v29  ;;  %v4219_v8 = vpop.f32.mrf.mxu2  ;;  %v1608_v11 = vpop.f32.mrf.mxu0  ;;  %v3525_v29 = vor.u32 %v3965_v17, %v3524_v15  ;;  %v3545_v2 = vor.u32 %v3968_v60, %v3542_v0 }
 0x114   :  { %2269 = vmatpush.bf16.msra.mxu1 %v3505_v32  ;;  %v4221_v10 = vpop.f32.mrf.mxu3  ;;  %v1621_v13 = vpop.f32.mrf.mxu1  ;;  %v3454_v32 = vld [vmem:[#allocation4 + $0x88] sm:$0xf0]  ;;  %v3604_v11 = vld [vmem:[#allocation4 + $0x1b0] sm:$0xf] }
 0x115   :  { %2224 = vmatmul.bf16.vlgmr.msrb.gmra.mxu1 %v1810_v5  ;;  %2235 = vmatpush.bf16.msrb.mxu2 %v3525_v29  ;;  %v3964_v13 = vld [vmem:[#allocation4 + $0x114] sm:$0xf]  ;;  %v3597_v29 = vor.u32 %v3983_v23, %v3596_v21 }
 0x116   :  { %v3529_v17 = vor.u32 %v3964_v13, %v3526_v16 }
 0x117   :  { %2257 = vmatpush.bf16.msra.mxu0 %v3433_v37  ;;  %v3457_v37 = vor.u32 %v3946_v30, %v3454_v32  ;;  %v3521_v30 = vor.u32 %v3962_v34, %v3518_v25  ;;  %v3981_v32 = vld [vmem:[#allocation4 + $0x194] sm:$0xf0] }
 0x118   :  { %2270 = vmatpush.bf16.msra.mxu1 %v3497_v58  ;;  %v3566_v58 = vld [vmem:[#allocation4 + $0x168] sm:$0xf0] }
 0x119   :  { %2236 = vmatpush.bf16.msrb.mxu2 %v3517_v38  ;;  %v3569_v44 = vor.u32 %v3974_v42, %v3566_v58  ;;  %v3638_v38 = vld [vmem:[#allocation4 + $0x1f8] sm:$0xf0]  ;;  %v3990_v58 = vld [vmem:[#allocation4 + $0x1e4] sm:$0xf] }
 0x11b   :  { %2258 = vmatpush.bf16.msra.mxu0 %v3425_v52  ;;  %v1634_v33 = vpop.f32.mrf.mxu2 }
 0x11c   :  { %2271 = vmatpush.bf16.msra.mxu1 %v3489_v61  ;;  %v1647_v36 = vpop.f32.mrf.mxu3  ;;  %v3629_v61 = vor.u32 %v3991_v54, %v3628_v53  ;;  %v3580_v33 = vld [vmem:[#allocation4 + $0x180] sm:$0xf] }
 0x11d   :  { %2281 = vmatpush.bf16.msra.mxu2 %v3577_v39  ;;  %v3581_v40 = vor.u32 %v3979_v35, %v3580_v33  ;;  %v3992_v36 = vld [vmem:[#allocation4 + $0x1f4] sm:$0xf] }
 0x11e   :  { %2243 = vmatpush.bf16.msrb.mxu3 %v3629_v61  ;;  %v3986_v61 = vld [vmem:[#allocation4 + $0x1c4] sm:$0xf] }
 0x11f   :  { %2259 = vmatpush.bf16.msra.mxu0 %v3417_v19  ;;  %v3621_v19 = vor.u32 %v3989_v59, %v3620_v22  ;;  %v3984_v22 = vld [vmem:[#allocation4 + $0x1b4] sm:$0xf]  ;;  %v3606_v59 = vld [vmem:[#allocation4 + $0x1b8] sm:$0xf0] }
 0x120   :  { %2272 = vmatpush.bf16.msra.mxu1 %v3481_v3  ;;  %v3987_v3 = vld [vmem:[#allocation4 + $0x1c4] sm:$0xf0]  ;;  %v3609_v60 = vor.u32 %v3984_v22, %v3606_v59 }
 0x121   :  { %2282 = vmatpush.bf16.msra.mxu2 %v3569_v44  ;;  %v3630_v44 = vld [vmem:[#allocation4 + $0x1e8] sm:$0xf0] }
 0x122   :  { %2244 = vmatpush.bf16.msrb.mxu3 %v3621_v19  ;;  %v3633_v46 = vor.u32 %v3990_v58, %v3630_v44  ;;  %v3598_v19 = vld [vmem:[#allocation4 + $0x1a8] sm:$0xf0]  ;;  %v4001_v58 = vld [vmem:[%s4290_s5 + $0x38] sm:$0xff]  ;;  %v4000_v44 = vld [vmem:[%s4290_s5 + $0x30] sm:$0xff] }
 0x123   :  { %2260 = vmatpush.bf16.msra.mxu0 %v3409_v9  ;;  %v3537_v9 = vor.u32 %v3966_v4, %v3534_v62  ;;  %v291_v4 = vperm.slane %v4194_v28, 3  ;;  %v4003_v22 = vld [vmem:[%s4290_s5 + $0x48] sm:$0xff] }
 0x124   :  { %2273 = vmatpush.bf16.msra.mxu1 %v3473_v14  ;;  %v3605_v14 = vor.u32 %v3985_v27, %v3604_v11 }
 0x125   :  { %2283 = vmatpush.bf16.msra.mxu2 %v3561_v51  ;;  %v3622_v51 = vld [vmem:[#allocation4 + $0x1d8] sm:$0xf0] }
 0x126   :  { %v3625_v53 = vor.u32 %v3988_v50, %v3622_v51  ;;  %v3997_v50 = vld [vmem:[%s4290_s5 + $0x18] sm:$0xff]  ;;  %v3996_v51 = vld [vmem:[%s4290_s5 + $0x10] sm:$0xff] }
 0x127   :  { %2261 = vmatpush.bf16.msra.mxu0 %v3401_v24 }
 0x128   :  { %2274 = vmatpush.bf16.msra.mxu1 %v3465_v43 }
 0x129   :  { %2284 = vmatpush.bf16.msra.mxu2 %v3553_v57  ;;  %v3617_v57 = vor.u32 %v3986_v61, %v3614_v56  ;;  %v4006_v61 = vld [vmem:[%s4290_s5 + $0x60] sm:$0xff]  ;;  %v4005_v56 = vld [vmem:[%s4290_s5 + $0x58] sm:$0xff] }
 0x12b   :  { %2262 = vmatpush.bf16.msra.mxu0 %v3393_v41  ;;  %v1658_v52 = vpop.f32.mrf.mxu0 }
 0x12c   :  { %2275 = vmatpush.bf16.msra.mxu1 %v3457_v37  ;;  %v1671_v55 = vpop.f32.mrf.mxu1  ;;  %v3641_v37 = vor.u32 %v3992_v36, %v3638_v38 }
 0x12d   :  { %2285 = vmatpush.bf16.msra.mxu2 %v3545_v2  ;;  %v3980_v2 = vld [vmem:[#allocation4 + $0x194] sm:$0xf] }
 0x12e   :  { %2263 = vmatmul.bf16.vlgmr.msra.gmra.mxu0 %v4214_v26  ;;  %v290_v26 = vperm.slane %v4194_v28, 2 }
 0x12f   :  { %2276 = vmatmul.bf16.vlgmr.msra.gmra.mxu1 %v1810_v5  ;;  %v3613_v5 = vor.u32 %v3987_v3, %v3612_v49  ;;  %v3590_v3 = vld [vmem:[#allocation4 + $0x198] sm:$0xf0]  ;;  %2443 = vmatpush.bf16.msrb.mxu0 %v4001_v58 }
 0x130   :  { %v1633_v6 = vadd.f32 %v4219_v8, %v290_v26  ;;  %v3593_v62 = vor.u32 %v3980_v2, %v3590_v3 }
 0x131   :  { %2245 = vmatpush.bf16.msrb.mxu3 %v3613_v5  ;;  %2286 = vmatpush.bf16.msra.mxu2 %v3537_v9  ;;  %v3978_v5 = vld [vmem:[#allocation4 + $0x184] sm:$0xf] }
 0x132   :  { %v1646_v15 = vadd.f32 %v4221_v10, %v1633_v6  ;;  %v3589_v10 = vor.u32 %v3981_v32, %v3588_v31  ;;  %v3582_v6 = vld [vmem:[#allocation4 + $0x188] sm:$0xf0] }
 0x133   :  { %v1684_v18 = vpop.f32.mrf.mxu2  ;;  %v1660_v7 = vpop.f32.mrf.mxu0  ;;  %v3585_v9 = vor.u32 %v3978_v5, %v3582_v6  ;;  %2444 = vmatpush.bf16.msrb.mxu0 %v4000_v44 }
 0x134   :  { %v1697_v1 = vpop.f32.mrf.mxu3  ;;  %v1673_v12 = vpop.f32.mrf.mxu1  ;;  %v1659_v43 = vadd.f32 %v1658_v52, %v1646_v15 }
 0x135   :  { %2246 = vmatpush.bf16.msrb.mxu3 %v3605_v14  ;;  %2287 = vmatpush.bf16.msra.mxu2 %v3529_v17 }
 0x136   :  { %v1672_v20 = vadd.f32 %v1671_v55, %v1659_v43 }
 0x138   :  { %v1685_v41 = vadd.f32 %v1684_v18, %v1672_v20  ;;  %v3982_v18 = vld [vmem:[#allocation4 + $0x1a4] sm:$0xf] }
 0x139   :  { %2247 = vmatpush.bf16.msrb.mxu3 %v3597_v29  ;;  %2288 = vmatpush.bf16.msra.mxu2 %v3521_v30  ;;  %v1877_v30 = vld [vmem:[%s4289_s4] sm:$0x3] }
 0x13a   :  { %v1698_v39 = vadd.f32 %v1697_v1, %v1685_v41  ;;  %v3601_v1 = vor.u32 %v3982_v18, %v3598_v19  ;;  %v1879_v31 = vperm.slane %v1877_v30, 0 }
 0x13b   :  { %v1686_v24 = vpop.f32.mrf.mxu2 }
 0x13c   :  { %v1699_v8 = vpop.f32.mrf.mxu3 }
 0x13d   :  { %2248 = vmatpush.bf16.msrb.mxu3 %v3589_v10 }
 0x141   :  { %2249 = vmatpush.bf16.msrb.mxu3 %v3581_v40  ;;  %v1880_v40 = vperm.slane %v1877_v30, 1 }
 0x145   :  { %2294 = vmatpush.bf16.msra.mxu3 %v3641_v37 }
 0x149   :  { %2295 = vmatpush.bf16.msra.mxu3 %v3633_v46  ;;  %v3998_v46 = vld [vmem:[%s4290_s5 + $0x20] sm:$0xff] }
 0x14b   :  { %v1710_v42 = vpop.f32.mrf.mxu0 }
 0x14c   :  { %v1711_v45 = vadd.f32 %v1710_v42, %v1698_v39  ;;  %v1723_v47 = vpop.f32.mrf.mxu1 }
 0x14d   :  { %2296 = vmatpush.bf16.msra.mxu3 %v3625_v53  ;;  %v1724_v7 = vadd.f32 %v1723_v47, %v291_v4  ;;  %v4009_v47 = vld [vmem:[%s4290_s5 + $0x78] sm:$0xff]  ;;  %v3995_v53 = vld [vmem:[%s4290_s5 + $0x8] sm:$0xff] }
 0x14e   :  { %v1807_v63 = vmax.f32 %v1711_v45, 0.0  ;;  %v3999_v45 = vld [vmem:[%s4290_s5 + $0x28] sm:$0xff]  ;;  %2456 = vmatpush.bf16.msrb.mxu1 %v4009_v47 }
 0x14f   :  { %2445 = vmatpush.bf16.msrb.mxu0 %v3999_v45 }
 0x150   :  { %v1811_v52 = vpack.c.bf16 %v1807_v63, %v1807_v63  ;;  %v4008_v63 = vld [vmem:[%s4290_s5 + $0x70] sm:$0xff] }
 0x151   :  { %2297 = vmatpush.bf16.msra.mxu3 %v3617_v57  ;;  %v4004_v57 = vld [vmem:[%s4290_s5 + $0x50] sm:$0xff] }
 0x152   :  { %2237 = vmatmul.bf16.vlgmr.msrb.gmra.mxu2 %v1811_v52  ;;  %2457 = vmatpush.bf16.msrb.mxu1 %v4008_v63 }
 0x153   :  { %v1736_v54 = vpop.f32.mrf.mxu2  ;;  %v1712_v55 = vpop.f32.mrf.mxu0  ;;  %2446 = vmatpush.bf16.msrb.mxu0 %v3998_v46 }
 0x154   :  { %v1749_v48 = vpop.f32.mrf.mxu3  ;;  %v1725_v26 = vpop.f32.mrf.mxu1  ;;  %v1737_v11 = vadd.f32 %v1736_v54, %v1724_v7  ;;  %v4007_v54 = vld [vmem:[%s4290_s5 + $0x68] sm:$0xff]  ;;  %v3994_v55 = vld [vmem:[%s4290_s5] sm:$0xff] }
 0x155   :  { %2298 = vmatpush.bf16.msra.mxu3 %v3609_v60  ;;  %v4002_v60 = vld [vmem:[%s4290_s5 + $0x40] sm:$0xff] }
 0x156   :  { %v1750_v27 = vadd.f32 %v1749_v48, %v1737_v11  ;;  %2458 = vmatpush.bf16.msrb.mxu1 %v4007_v54 }
 0x157   :  { %2447 = vmatpush.bf16.msrb.mxu0 %v3997_v50 }
 0x159   :  { %2299 = vmatpush.bf16.msra.mxu3 %v3601_v1 }
 0x15a   :  { %2459 = vmatpush.bf16.msrb.mxu1 %v4006_v61 }
 0x15b   :  { %v1738_v0 = vpop.f32.mrf.mxu2  ;;  %2448 = vmatpush.bf16.msrb.mxu0 %v3996_v51 }
 0x15c   :  { %v1751_v49 = vpop.f32.mrf.mxu3 }
 0x15d   :  { %2300 = vmatpush.bf16.msra.mxu3 %v3593_v62 }
 0x15e   :  { %2460 = vmatpush.bf16.msrb.mxu1 %v4005_v56 }
 0x15f   :  { %2449 = vmatpush.bf16.msrb.mxu0 %v3995_v53 }
 0x161   :  { %2301 = vmatpush.bf16.msra.mxu3 %v3585_v9 }
 0x162   :  { %2289 = vmatmul.bf16.vlgmr.msra.gmra.mxu2 %v1811_v52  ;;  %2461 = vmatpush.bf16.msrb.mxu1 %v4004_v57 }
 0x163   :  { %2450 = vmatpush.bf16.msrb.mxu0 %v3994_v55 }
 0x166   :  { %2462 = vmatpush.bf16.msrb.mxu1 %v4003_v22 }
 0x16a   :  { %2463 = vmatpush.bf16.msrb.mxu1 %v4002_v60 }
 0x16b   :  { %v1762_v12 = vpop.f32.mrf.mxu0 }
 0x16c   :  { %v1775_v13 = vpop.f32.mrf.mxu1  ;;  %v1763_v16 = vadd.f32 %v1762_v12, %v1750_v27  ;;  %v2469_v27 = vlaneseq  ;;  %v4016_v12 = vld [vmem:[%s4291_s6] ss:$0 sm:$0xff] }
 0x16e   :  { %v1776_v14 = vadd.f32 %v1775_v13, %v1763_v16  ;;  %v2470_v13 = vand.u32 127, %v2469_v27 }
 0x170   :  { %vm2471_vm0 = vcmp.lt.s32.totalorder %v2470_v13, 10 }
 0x173   :  { %v1788_v15 = vpop.f32.mrf.mxu2  ;;  %v1764_v23 = vpop.f32.mrf.mxu0 }
 0x174   :  { %v1789_v17 = vadd.f32 %v1788_v15, %v1776_v14  ;;  %v1801_v21 = vpop.f32.mrf.mxu3  ;;  %v1777_v28 = vpop.f32.mrf.mxu1 }
 0x176   :  { %v1802_v24 = vadd.f32 %v1801_v21, %v1789_v17 }
 0x178   :  { %v1808_v34 = vmax.f32 %v1802_v24, 0.0 }
 0x17a   :  { %v1812_v25 = vpack.c.bf16 %v1808_v34, %v1808_v34 }
 0x17b   :  { %v1790_v8 = vpop.f32.mrf.mxu2 }
 0x17c   :  { %v1803_v29 = vpop.f32.mrf.mxu3  ;;  %2250 = vmatmul.bf16.vlgmr.msrb.gmra.mxu3 %v1812_v25 }
 0x18b   :  { %v2212_v43 = vpop.f32.mrf.mxu0 }
 0x18c   :  { %2302 = vmatmul.bf16.vlgmr.msra.gmra.mxu3 %v1812_v25  ;;  %v2213_v32 = vadd.f32 %v2212_v43, %v1879_v31 }
 0x192   :  { %v2225_v33 = vpop.f32.mrf.mxu1 }
 0x193   :  { %v2214_v20 = vpop.f32.mrf.mxu0  ;;  %v2226_v10 = vadd.f32 %v2225_v33, %v2213_v32 }
 0x19a   :  { %v2227_v35 = vpop.f32.mrf.mxu1 }
 0x1ab   :  { %v2264_v41 = vpop.f32.mrf.mxu0 }
 0x1ac   :  { %v2265_v36 = vadd.f32 %v2264_v41, %v1880_v40  ;;  %v2277_v38 = vpop.f32.mrf.mxu1 }
 0x1ae   :  { %v2278_v37 = vadd.f32 %v2277_v38, %v2265_v36 }
 0x1b3   :  { %v2266_v39 = vpop.f32.mrf.mxu0 }
 0x1b4   :  { %v2279_v42 = vpop.f32.mrf.mxu1 }
 0x1d5   :  { %v2238_v52 = vpop.f32.mrf.mxu2 }
 0x1d6   :  { %v2239_v18 = vadd.f32 %v2238_v52, %v2226_v10 }
 0x1dd   :  { %v2240_v48 = vpop.f32.mrf.mxu2 }
 0x1e5   :  { %v2290_v26 = vpop.f32.mrf.mxu2 }
 0x1e6   :  { %v2291_v3 = vadd.f32 %v2290_v26, %v2278_v37 }
 0x1ed   :  { %v2292_v59 = vpop.f32.mrf.mxu2 }
 0x1ff   :  { %v2251_v19 = vpop.f32.mrf.mxu3 }
 0x200   :  { %v2252_v0 = vadd.f32 %v2251_v19, %v2239_v18 }
 0x202   :  { %v2307_v49 = vmax.f32 %v2252_v0, 0.0 }
 0x204   :  { %v2309_v1 = vpack.c.bf16 %v2307_v49, %v2307_v49 }
 0x206   :  { %2451 = vmatmul.bf16.vlgmr.msrb.gmra.mxu0 %v2309_v1 }
 0x207   :  { %v2253_v2 = vpop.f32.mrf.mxu3 }
 0x20f   :  { %v2303_v4 = vpop.f32.mrf.mxu3 }
 0x210   :  { %v2304_v62 = vadd.f32 %v2303_v4, %v2291_v3 }
 0x212   :  { %v2308_v5 = vmax.f32 %v2304_v62, 0.0 }
 0x214   :  { %v2310_v6 = vpack.c.bf16 %v2308_v5, %v2308_v5 }
 0x216   :  { %2464 = vmatmul.bf16.vlgmr.msrb.gmra.mxu1 %v2310_v6 }
 0x217   :  { %v2305_v7 = vpop.f32.mrf.mxu3 }
 0x283   :  { %v2452_v9 = vpop.f32.mrf.mxu0 }
 0x284   :  { %v2453_v16 = vadd.f32 %v4016_v12, %v2452_v9 }
 0x28b   :  { %v2454_v11 = vpop.f32.mrf.mxu0 }
 0x293   :  { %v2465_v14 = vpop.f32.mrf.mxu1 }
 0x294   :  { %v2466_v15 = vadd.f32 %v2465_v14, %v2453_v16 }
 0x296   :  { %v2472_v17 = vsel %vm2471_vm0, %v2466_v15, -1e+30 }
 0x297   :  { %2473 = vmax.xlane.f32.xlu0 %v2472_v17 }
 0x29b   :  { %v2467_v21 = vpop.f32.mrf.mxu1 }
 0x30a   :  { %v2474_v23 = vpop.xlane.xlu0 %2473 }
 0x30b   :  { %v2475_v28 = vsub.f32 %v2472_v17, %v2474_v23 }
 0x30d   :  { %v2476_v24 = vmul.f32 1.442695, %v2475_v28 }
 0x30f   :  { %4017 = vpow2.f32 %v2476_v24 }
 0x315   :  { %v4018_v34 = vpop.eup %4017 }
 0x316   :  { %2478 = vadd.xlane.f32.xlu0 %v4018_v34 }
 0x389   :  { %v2479_v25 = vpop.xlane.xlu0 %2478 }
 0x38a   :  { %4019 = vlog2.f32 %v2479_v25 }
 0x390   :  { %v4020_v8 = vpop.eup %4019 }
 0x391   :  { %v2481_v29 = vmul.f32 0.6931472, %v4020_v8 }
 0x393   :  { %v2482_v43 = vsub.f32 %v2475_v28, %v2481_v29 }
 0x395   :  { %2483 = vst [vmem:[%s4292_s7] sm:$0xff] %v2482_v43 }
 0x396   :  { %2488 = vsyncpa [#allocation3], 1 }
 0x397   :  { %2489 = vsyncpa [#allocation5], 1 }

</bundles_post_ra>
